<compile_context>
chip_gen: v5e
topology: v5e:2x2
jax: 0.10.0
libtpu: 0.0.40
codegen_flags: <defaults>
</compile_context>

<pallas_src>
import math
import jax
import jax.numpy as jnp
from jax.experimental import pallas as pl
from jax.experimental.pallas import tpu as pltpu

# ---------------- config (small, consistent with the module) ----------------
DIM         = 32      # config['dim']
NUM_HEAD    = 4       # config['num_head']
HEAD_DIM    = 8       # config['head_dim']  (num_head * head_dim == dim)
HIDDEN_DIM  = 64      # config['hidden_dim']
LINFORMER_K = 8       # config['linformer_k']
SEQ_LEN     = 16      # config['max_seq_len']
NUM_LAYERS  = 2       # config['num_layers'] (shared weights)
BATCH       = 2
LN_EPS      = 1e-5
INNER       = NUM_HEAD * HEAD_DIM          # 32
QKV_PAD     = 128                          # lane-dense fused QKV output width
assert 3 * INNER <= QKV_PAD


def _layernorm(x, gamma, beta):
    mu = jnp.mean(x, axis=-1, keepdims=True)
    xc = x - mu
    var = jnp.mean(xc * xc, axis=-1, keepdims=True)
    inv = jax.lax.rsqrt(var + LN_EPS)
    return xc * inv * gamma + beta


def backbone_kernel(x_ref, mask_ref,
                    wqkv_ref, bqkv_ref,
                    ecat_ref, kdmask_ref, segmask_ref,
                    wo_ref, bo_ref,
                    g1_ref, be1_ref,
                    w1_ref, bf1_ref, w2_ref, bf2_ref,
                    g2_ref, be2_ref,
                    o_ref):
    # Whole problem is VMEM / vreg resident: B*S = 32 rows, D = 32 features.
    x    = x_ref[...]        # [B*S, D]
    mask = mask_ref[...]     # [B*S, 1]  (1.0 = keep)

    # Weights loaded once, reused by every (shared-weight) layer.
    wqkv = wqkv_ref[...]     # [D, 128]   (wq|wk|wv, zero padded)
    bqkv = bqkv_ref[...]     # [1, 128]
    ecat = ecat_ref[...]     # [H*k, S]   rows h*k..h*k+k-1 = E[h]
    kdm  = kdmask_ref[...]   # [H*k, H*d] block-diag 0/1 (head selector)
    segm = segmask_ref[...]  # [H*k, H*k] block-diag 0/1 (segment-sum matrix)
    wo   = wo_ref[...]       # [INNER, D]
    bo   = bo_ref[...]       # [1, D]
    g1, be1 = g1_ref[...], be1_ref[...]
    w1, bf1 = w1_ref[...], bf1_ref[...]
    w2, bf2 = w2_ref[...], bf2_ref[...]
    g2, be2 = g2_ref[...], be2_ref[...]

    inv_sqrt_d = 1.0 / math.sqrt(HEAD_DIM)

    for _ in range(NUM_LAYERS):            # shared weights; small, unrolled
        # ---- fused QKV projection: one MXU push for the whole batch -------
        qkv = jnp.dot(x, wqkv, preferred_element_type=jnp.float32) + bqkv  # [BS,128]
        qp = qkv[:, 0 * INNER:1 * INNER]                 # [BS, INNER]
        kp = qkv[:, 1 * INNER:2 * INNER] * mask          # K * mask (per row)
        vp = qkv[:, 2 * INNER:3 * INNER] * mask          # V * mask

        # ---- Linformer attention, all heads batched via block-diag masks --
        ctx_rows = []
        for b in range(BATCH):                           # B = 2, unrolled
            r0 = b * SEQ_LEN
            qb = qp[r0:r0 + SEQ_LEN]                     # [S, H*d]
            kb = kp[r0:r0 + SEQ_LEN]
            vb = vp[r0:r0 + SEQ_LEN]

            # All heads' K'/V' projections in one matmul each; off-diagonal
            # (cross-head) blocks are zeroed by the elementwise block mask.
            F = jnp.dot(ecat, kb, preferred_element_type=jnp.float32) * kdm  # [Hk, Hd]
            G = jnp.dot(ecat, vb, preferred_element_type=jnp.float32) * kdm  # [Hk, Hd]

            # scores[s, h*k+kk] = <Q_h[s,:], Kproj_h[kk,:]> / sqrt(d)
            scores = jax.lax.dot_general(
                qb, F, (((1,), (1,)), ((), ())),
                preferred_element_type=jnp.float32) * inv_sqrt_d             # [S, Hk]

            # Per-head softmax using the global row max (exact: shift-invariant;
            # safe here since cross-head score ranges never differ by ~80+).
            m = jnp.max(scores, axis=-1, keepdims=True)
            p = jnp.exp(scores - m)
            ssum = jnp.dot(p, segm, preferred_element_type=jnp.float32)      # per-head sums
            attn = p * pl.reciprocal(ssum, approx=True)                      # EUP rcp

            # ctx[s, h*d+dd] = sum_kk attn_h[s,kk] * Vproj_h[kk,dd]
            ctx_rows.append(jnp.dot(attn, G, preferred_element_type=jnp.float32))

        ctx = jnp.concatenate(ctx_rows, axis=0)          # [BS, INNER] (sublane concat)

        # ---- output projection + residual + LayerNorm 1 --------------------
        mha = jnp.dot(ctx, wo, preferred_element_type=jnp.float32) + bo
        y = _layernorm(x + mha, g1, be1)                 # dropout1 == identity

        # ---- FFN: Linear -> exact GELU -> Linear ---------------------------
        h1 = jnp.dot(y, w1, preferred_element_type=jnp.float32) + bf1
        h1 = 0.5 * h1 * (1.0 + jax.lax.erf(h1 * (1.0 / math.sqrt(2.0))))
        z = jnp.dot(h1, w2, preferred_element_type=jnp.float32) + bf2

        # ---- residual + LayerNorm 2 ----------------------------------------
        x = _layernorm(y + z, g2, be2)                   # dropout2 == identity

    o_ref[...] = x


def backbone_forward(x, mask, params):
    """x: [B, S, D], mask: [B, S] (1.0 = keep). Returns [B, S, D]."""
    B, S, D = x.shape
    x2 = x.reshape(B * S, D).astype(jnp.float32)
    mask2 = mask.astype(jnp.float32).reshape(B * S, 1)

    # --- pack weights once in the wrapper (free, XLA-side) -----------------
    wqkv = jnp.concatenate([params['wq'], params['wk'], params['wv']], axis=1)   # [D, 3*INNER]
    bqkv = jnp.concatenate([params['bq'], params['bk'], params['bv']], axis=1)   # [1, 3*INNER]
    pad = QKV_PAD - 3 * INNER
    wqkv = jnp.pad(wqkv, ((0, 0), (0, pad)))
    bqkv = jnp.pad(bqkv, ((0, 0), (0, pad)))

    ecat = params['E'].reshape(NUM_HEAD * LINFORMER_K, SEQ_LEN)                  # [Hk, S]
    row_head = jnp.arange(NUM_HEAD * LINFORMER_K) // LINFORMER_K
    col_head_d = jnp.arange(NUM_HEAD * HEAD_DIM) // HEAD_DIM
    kdmask = (row_head[:, None] == col_head_d[None, :]).astype(jnp.float32)      # [Hk, Hd]
    segmask = (row_head[:, None] == row_head[None, :]).astype(jnp.float32)       # [Hk, Hk]

    args = [x2, mask2, wqkv, bqkv, ecat, kdmask, segmask,
            params['wo'], params['bo'],
            params['g1'], params['be1'],
            params['w1'], params['bf1'], params['w2'], params['bf2'],
            params['g2'], params['be2']]

    # No grid: one kernel invocation processes all layers and the whole batch.
    # Every operand is simply placed whole in VMEM (no per-step pipelining).
    # (On v7x one could instead use grid=(B,) marked "parallel" to occupy both
    #  TensorCores; at this size the single-step launch overhead win dominates.)
    in_specs = [pl.BlockSpec(memory_space=pltpu.MemorySpace.VMEM) for _ in args]
    out = pl.pallas_call(
        backbone_kernel,
        out_shape=jax.ShapeDtypeStruct((B * S, D), jnp.float32),
        in_specs=in_specs,
        out_specs=pl.BlockSpec(memory_space=pltpu.MemorySpace.VMEM),
    )(*args)
    return out.reshape(B, S, D)


# ---------------------- pure-JAX reference (for checking) -------------------
def backbone_reference(x, mask, params, num_layers=NUM_LAYERS):
    B, S, D = x.shape
    E = params['E']                                   # [H, k, S]
    m4 = mask.astype(jnp.float32)[:, None, :, None]   # [B, 1, S, 1]

    def split_heads(t):
        return t.reshape(B, S, NUM_HEAD, HEAD_DIM).transpose(0, 2, 1, 3)

    def ln(t, g, b):
        mu = jnp.mean(t, -1, keepdims=True)
        v = jnp.mean((t - mu) ** 2, -1, keepdims=True)
        return (t - mu) * jax.lax.rsqrt(v + LN_EPS) * g + b

    for _ in range(num_layers):
        Q = split_heads(x @ params['wq'] + params['bq'])
        K = split_heads(x @ params['wk'] + params['bk'])
        V = split_heads(x @ params['wv'] + params['bv'])
        Kp = jnp.einsum('hks,bhsd->bhkd', E, K * m4)
        Vp = jnp.einsum('hks,bhsd->bhkd', E, V * m4)
        dot = jnp.einsum('bhsd,bhkd->bhsk', Q, Kp) / math.sqrt(HEAD_DIM)
        attn = jax.nn.softmax(dot, axis=-1)
        ctx = jnp.einsum('bhsk,bhkd->bhsd', attn, Vp)
        ctx = ctx.transpose(0, 2, 1, 3).reshape(B, S, INNER)
        mha = ctx @ params['wo'] + params['bo']
        y = ln(x + mha, params['g1'], params['be1'])
        h1 = y @ params['w1'] + params['bf1']
        h1 = 0.5 * h1 * (1.0 + jax.lax.erf(h1 / math.sqrt(2.0)))
        z = h1 @ params['w2'] + params['bf2']
        x = ln(y + z, params['g2'], params['be2'])
    return x


def init_params(key):
    ks = jax.random.split(key, 16)
    n = lambda k, shape, scale: (jax.random.normal(k, shape, jnp.float32) * scale)
    return {
        # nn.Linear weights stored pre-transposed as [in, out].
        'wq': n(ks[0], (DIM, INNER), 0.02), 'bq': jnp.zeros((1, INNER), jnp.float32),
        'wk': n(ks[1], (DIM, INNER), 0.02), 'bk': jnp.zeros((1, INNER), jnp.float32),
        'wv': n(ks[2], (DIM, INNER), 0.02), 'bv': jnp.zeros((1, INNER), jnp.float32),
        # E ~ randn(H, k, S) / sqrt(k)
        'E':  n(ks[3], (NUM_HEAD, LINFORMER_K, SEQ_LEN), 1.0 / math.sqrt(LINFORMER_K)),
        'wo': n(ks[4], (INNER, DIM), 0.02), 'bo': jnp.zeros((1, DIM), jnp.float32),
        'g1': jnp.ones((1, DIM), jnp.float32), 'be1': jnp.zeros((1, DIM), jnp.float32),
        'w1': n(ks[5], (DIM, HIDDEN_DIM), 0.02), 'bf1': jnp.zeros((1, HIDDEN_DIM), jnp.float32),
        'w2': n(ks[6], (HIDDEN_DIM, DIM), 0.02), 'bf2': jnp.zeros((1, DIM), jnp.float32),
        'g2': jnp.ones((1, DIM), jnp.float32), 'be2': jnp.zeros((1, DIM), jnp.float32),
    }


if __name__ == "__main__":
    key = jax.random.PRNGKey(0)
    kx, kp = jax.random.split(key)
    x = jax.random.normal(kx, (BATCH, SEQ_LEN, DIM), jnp.float32)
    # mask: last 4 tokens of the second example are padding
    mask = jnp.ones((BATCH, SEQ_LEN), jnp.float32)
    mask = mask.at[1, -4:].set(0.0)

    params = init_params(kp)
    out = backbone_forward(x, mask, params)
    jax.block_until_ready(out)
    assert out.shape == (BATCH, SEQ_LEN, DIM)

    # Sanity check against a pure-JAX reference (loose tolerance: the kernel
    # uses the approximate EUP reciprocal in the softmax normalization).
    ref = backbone_reference(x, mask, params)
    assert jnp.allclose(out, ref, rtol=1e-2, atol=1e-2), "kernel/reference mismatch"

    print("KERNEL_OK")
</pallas_src>

<mosaic_0001>
module attributes {stable_mosaic.version = 11 : i64} {
  func.func @backbone_kernel(%arg0: memref<32x32xf32, #tpu.memory_space<vmem>>, %arg1: memref<32x1xf32, #tpu.memory_space<vmem>>, %arg2: memref<32x128xf32, #tpu.memory_space<vmem>>, %arg3: memref<1x128xf32, #tpu.memory_space<vmem>>, %arg4: memref<32x16xf32, #tpu.memory_space<vmem>>, %arg5: memref<32x32xf32, #tpu.memory_space<vmem>>, %arg6: memref<32x32xf32, #tpu.memory_space<vmem>>, %arg7: memref<32x32xf32, #tpu.memory_space<vmem>>, %arg8: memref<1x32xf32, #tpu.memory_space<vmem>>, %arg9: memref<1x32xf32, #tpu.memory_space<vmem>>, %arg10: memref<1x32xf32, #tpu.memory_space<vmem>>, %arg11: memref<32x64xf32, #tpu.memory_space<vmem>>, %arg12: memref<1x64xf32, #tpu.memory_space<vmem>>, %arg13: memref<64x32xf32, #tpu.memory_space<vmem>>, %arg14: memref<1x32xf32, #tpu.memory_space<vmem>>, %arg15: memref<1x32xf32, #tpu.memory_space<vmem>>, %arg16: memref<1x32xf32, #tpu.memory_space<vmem>>, %arg17: memref<32x32xf32, #tpu.memory_space<vmem>>) attributes {dimension_semantics = [], scalar_prefetch = 0 : i64, scratch_operands = 0 : i64, tpu.core_type = #tpu.core_type<tc>} {
    %c0 = arith.constant 0 : index
    %c0_0 = arith.constant 0 : index
    %0 = vector.load %arg0[%c0, %c0_0] : memref<32x32xf32, #tpu.memory_space<vmem>>, vector<32x32xf32>
    %c0_1 = arith.constant 0 : index
    %c0_2 = arith.constant 0 : index
    %1 = vector.load %arg1[%c0_1, %c0_2] : memref<32x1xf32, #tpu.memory_space<vmem>>, vector<32x1xf32>
    %c0_3 = arith.constant 0 : index
    %c0_4 = arith.constant 0 : index
    %2 = vector.load %arg2[%c0_3, %c0_4] : memref<32x128xf32, #tpu.memory_space<vmem>>, vector<32x128xf32>
    %c0_5 = arith.constant 0 : index
    %c0_6 = arith.constant 0 : index
    %3 = vector.load %arg3[%c0_5, %c0_6] : memref<1x128xf32, #tpu.memory_space<vmem>>, vector<1x128xf32>
    %c0_7 = arith.constant 0 : index
    %c0_8 = arith.constant 0 : index
    %4 = vector.load %arg4[%c0_7, %c0_8] : memref<32x16xf32, #tpu.memory_space<vmem>>, vector<32x16xf32>
    %c0_9 = arith.constant 0 : index
    %c0_10 = arith.constant 0 : index
    %5 = vector.load %arg5[%c0_9, %c0_10] : memref<32x32xf32, #tpu.memory_space<vmem>>, vector<32x32xf32>
    %c0_11 = arith.constant 0 : index
    %c0_12 = arith.constant 0 : index
    %6 = vector.load %arg6[%c0_11, %c0_12] : memref<32x32xf32, #tpu.memory_space<vmem>>, vector<32x32xf32>
    %c0_13 = arith.constant 0 : index
    %c0_14 = arith.constant 0 : index
    %7 = vector.load %arg7[%c0_13, %c0_14] : memref<32x32xf32, #tpu.memory_space<vmem>>, vector<32x32xf32>
    %c0_15 = arith.constant 0 : index
    %c0_16 = arith.constant 0 : index
    %8 = vector.load %arg8[%c0_15, %c0_16] : memref<1x32xf32, #tpu.memory_space<vmem>>, vector<1x32xf32>
    %c0_17 = arith.constant 0 : index
    %c0_18 = arith.constant 0 : index
    %9 = vector.load %arg9[%c0_17, %c0_18] : memref<1x32xf32, #tpu.memory_space<vmem>>, vector<1x32xf32>
    %c0_19 = arith.constant 0 : index
    %c0_20 = arith.constant 0 : index
    %10 = vector.load %arg10[%c0_19, %c0_20] : memref<1x32xf32, #tpu.memory_space<vmem>>, vector<1x32xf32>
    %c0_21 = arith.constant 0 : index
    %c0_22 = arith.constant 0 : index
    %11 = vector.load %arg11[%c0_21, %c0_22] : memref<32x64xf32, #tpu.memory_space<vmem>>, vector<32x64xf32>
    %c0_23 = arith.constant 0 : index
    %c0_24 = arith.constant 0 : index
    %12 = vector.load %arg12[%c0_23, %c0_24] : memref<1x64xf32, #tpu.memory_space<vmem>>, vector<1x64xf32>
    %c0_25 = arith.constant 0 : index
    %c0_26 = arith.constant 0 : index
    %13 = vector.load %arg13[%c0_25, %c0_26] : memref<64x32xf32, #tpu.memory_space<vmem>>, vector<64x32xf32>
    %c0_27 = arith.constant 0 : index
    %c0_28 = arith.constant 0 : index
    %14 = vector.load %arg14[%c0_27, %c0_28] : memref<1x32xf32, #tpu.memory_space<vmem>>, vector<1x32xf32>
    %c0_29 = arith.constant 0 : index
    %c0_30 = arith.constant 0 : index
    %15 = vector.load %arg15[%c0_29, %c0_30] : memref<1x32xf32, #tpu.memory_space<vmem>>, vector<1x32xf32>
    %c0_31 = arith.constant 0 : index
    %c0_32 = arith.constant 0 : index
    %16 = vector.load %arg16[%c0_31, %c0_32] : memref<1x32xf32, #tpu.memory_space<vmem>>, vector<1x32xf32>
    %cst = arith.constant dense<0.000000e+00> : vector<32x128xf32>
    %17 = tpu.matmul %0, %2, %cst {dimension_numbers = #tpu.dot_dimension_numbers<[1], [0], [0], [1], [0, 0, 1, 1], [], []>} : vector<32x32xf32>, vector<32x128xf32>, vector<32x128xf32> -> vector<32x128xf32>
    %18 = vector.broadcast %3 : vector<1x128xf32> to vector<32x128xf32>
    %19 = arith.addf %17, %18 : vector<32x128xf32>
    %20 = vector.extract_strided_slice %19 {offsets = [0, 0], sizes = [32, 32], strides = [1, 1]} : vector<32x128xf32> to vector<32x32xf32>
    %21 = vector.extract_strided_slice %19 {offsets = [0, 32], sizes = [32, 32], strides = [1, 1]} : vector<32x128xf32> to vector<32x32xf32>
    %22 = vector.broadcast %1 : vector<32x1xf32> to vector<32x32xf32>
    %23 = arith.mulf %21, %22 : vector<32x32xf32>
    %24 = vector.extract_strided_slice %19 {offsets = [0, 64], sizes = [32, 32], strides = [1, 1]} : vector<32x128xf32> to vector<32x32xf32>
    %25 = vector.broadcast %1 : vector<32x1xf32> to vector<32x32xf32>
    %26 = arith.mulf %24, %25 : vector<32x32xf32>
    %27 = vector.extract_strided_slice %20 {offsets = [0, 0], sizes = [16, 32], strides = [1, 1]} : vector<32x32xf32> to vector<16x32xf32>
    %28 = vector.extract_strided_slice %23 {offsets = [0, 0], sizes = [16, 32], strides = [1, 1]} : vector<32x32xf32> to vector<16x32xf32>
    %29 = vector.extract_strided_slice %26 {offsets = [0, 0], sizes = [16, 32], strides = [1, 1]} : vector<32x32xf32> to vector<16x32xf32>
    %cst_33 = arith.constant dense<0.000000e+00> : vector<32x32xf32>
    %30 = tpu.matmul %4, %28, %cst_33 {dimension_numbers = #tpu.dot_dimension_numbers<[1], [0], [0], [1], [0, 0, 1, 1], [], []>} : vector<32x16xf32>, vector<16x32xf32>, vector<32x32xf32> -> vector<32x32xf32>
    %31 = arith.mulf %30, %5 : vector<32x32xf32>
    %cst_34 = arith.constant dense<0.000000e+00> : vector<32x32xf32>
    %32 = tpu.matmul %4, %29, %cst_34 {dimension_numbers = #tpu.dot_dimension_numbers<[1], [0], [0], [1], [0, 0, 1, 1], [], []>} : vector<32x16xf32>, vector<16x32xf32>, vector<32x32xf32> -> vector<32x32xf32>
    %33 = arith.mulf %32, %5 : vector<32x32xf32>
    %cst_35 = arith.constant dense<0.000000e+00> : vector<16x32xf32>
    %34 = tpu.matmul %27, %31, %cst_35 {dimension_numbers = #tpu.dot_dimension_numbers<[1], [1], [0], [0], [0, 0, 1, 0], [], []>} : vector<16x32xf32>, vector<32x32xf32>, vector<16x32xf32> -> vector<16x32xf32>
    %cst_36 = arith.constant 0.353553385 : f32
    %35 = vector.broadcast %cst_36 : f32 to vector<16x32xf32>
    %36 = arith.mulf %34, %35 : vector<16x32xf32>
    %cst_37 = arith.constant dense<0xFF800000> : vector<16xf32>
    %37 = vector.multi_reduction <maximumf>, %36, %cst_37 [1] : vector<16x32xf32> to vector<16xf32>
    %38 = vector.shape_cast %37 : vector<16xf32> to vector<16x1xf32>
    %39 = vector.broadcast %38 : vector<16x1xf32> to vector<16x32xf32>
    %40 = arith.subf %36, %39 : vector<16x32xf32>
    %41 = math.exp %40 : vector<16x32xf32>
    %cst_38 = arith.constant dense<0.000000e+00> : vector<16x32xf32>
    %42 = tpu.matmul %41, %6, %cst_38 {dimension_numbers = #tpu.dot_dimension_numbers<[1], [0], [0], [1], [0, 0, 1, 1], [], []>} : vector<16x32xf32>, vector<32x32xf32>, vector<16x32xf32> -> vector<16x32xf32>
    %43 = tpu.reciprocal %42 {approx = true} : vector<16x32xf32> -> vector<16x32xf32>
    %44 = arith.mulf %41, %43 : vector<16x32xf32>
    %cst_39 = arith.constant dense<0.000000e+00> : vector<16x32xf32>
    %45 = tpu.matmul %44, %33, %cst_39 {dimension_numbers = #tpu.dot_dimension_numbers<[1], [0], [0], [1], [0, 0, 1, 1], [], []>} : vector<16x32xf32>, vector<32x32xf32>, vector<16x32xf32> -> vector<16x32xf32>
    %46 = vector.extract_strided_slice %20 {offsets = [16, 0], sizes = [16, 32], strides = [1, 1]} : vector<32x32xf32> to vector<16x32xf32>
    %47 = vector.extract_strided_slice %23 {offsets = [16, 0], sizes = [16, 32], strides = [1, 1]} : vector<32x32xf32> to vector<16x32xf32>
    %48 = vector.extract_strided_slice %26 {offsets = [16, 0], sizes = [16, 32], strides = [1, 1]} : vector<32x32xf32> to vector<16x32xf32>
    %cst_40 = arith.constant dense<0.000000e+00> : vector<32x32xf32>
    %49 = tpu.matmul %4, %47, %cst_40 {dimension_numbers = #tpu.dot_dimension_numbers<[1], [0], [0], [1], [0, 0, 1, 1], [], []>} : vector<32x16xf32>, vector<16x32xf32>, vector<32x32xf32> -> vector<32x32xf32>
    %50 = arith.mulf %49, %5 : vector<32x32xf32>
    %cst_41 = arith.constant dense<0.000000e+00> : vector<32x32xf32>
    %51 = tpu.matmul %4, %48, %cst_41 {dimension_numbers = #tpu.dot_dimension_numbers<[1], [0], [0], [1], [0, 0, 1, 1], [], []>} : vector<32x16xf32>, vector<16x32xf32>, vector<32x32xf32> -> vector<32x32xf32>
    %52 = arith.mulf %51, %5 : vector<32x32xf32>
    %cst_42 = arith.constant dense<0.000000e+00> : vector<16x32xf32>
    %53 = tpu.matmul %46, %50, %cst_42 {dimension_numbers = #tpu.dot_dimension_numbers<[1], [1], [0], [0], [0, 0, 1, 0], [], []>} : vector<16x32xf32>, vector<32x32xf32>, vector<16x32xf32> -> vector<16x32xf32>
    %cst_43 = arith.constant 0.353553385 : f32
    %54 = vector.broadcast %cst_43 : f32 to vector<16x32xf32>
    %55 = arith.mulf %53, %54 : vector<16x32xf32>
    %cst_44 = arith.constant dense<0xFF800000> : vector<16xf32>
    %56 = vector.multi_reduction <maximumf>, %55, %cst_44 [1] : vector<16x32xf32> to vector<16xf32>
    %57 = vector.shape_cast %56 : vector<16xf32> to vector<16x1xf32>
    %58 = vector.broadcast %57 : vector<16x1xf32> to vector<16x32xf32>
    %59 = arith.subf %55, %58 : vector<16x32xf32>
    %60 = math.exp %59 : vector<16x32xf32>
    %cst_45 = arith.constant dense<0.000000e+00> : vector<16x32xf32>
    %61 = tpu.matmul %60, %6, %cst_45 {dimension_numbers = #tpu.dot_dimension_numbers<[1], [0], [0], [1], [0, 0, 1, 1], [], []>} : vector<16x32xf32>, vector<32x32xf32>, vector<16x32xf32> -> vector<16x32xf32>
    %62 = tpu.reciprocal %61 {approx = true} : vector<16x32xf32> -> vector<16x32xf32>
    %63 = arith.mulf %60, %62 : vector<16x32xf32>
    %cst_46 = arith.constant dense<0.000000e+00> : vector<16x32xf32>
    %64 = tpu.matmul %63, %52, %cst_46 {dimension_numbers = #tpu.dot_dimension_numbers<[1], [0], [0], [1], [0, 0, 1, 1], [], []>} : vector<16x32xf32>, vector<32x32xf32>, vector<16x32xf32> -> vector<16x32xf32>
    %65 = tpu.concatenate %45, %64 in 0 : vector<16x32xf32>, vector<16x32xf32> -> vector<32x32xf32>
    %cst_47 = arith.constant dense<0.000000e+00> : vector<32x32xf32>
    %66 = tpu.matmul %65, %7, %cst_47 {dimension_numbers = #tpu.dot_dimension_numbers<[1], [0], [0], [1], [0, 0, 1, 1], [], []>} : vector<32x32xf32>, vector<32x32xf32>, vector<32x32xf32> -> vector<32x32xf32>
    %67 = vector.broadcast %8 : vector<1x32xf32> to vector<32x32xf32>
    %68 = arith.addf %66, %67 : vector<32x32xf32>
    %69 = arith.addf %0, %68 : vector<32x32xf32>
    %cst_48 = arith.constant dense<0.000000e+00> : vector<32xf32>
    %70 = vector.multi_reduction <add>, %69, %cst_48 [1] : vector<32x32xf32> to vector<32xf32>
    %71 = vector.shape_cast %70 : vector<32xf32> to vector<32x1xf32>
    %cst_49 = arith.constant 3.200000e+01 : f32
    %72 = vector.broadcast %cst_49 : f32 to vector<32x1xf32>
    %73 = arith.divf %71, %72 : vector<32x1xf32>
    %74 = vector.broadcast %73 : vector<32x1xf32> to vector<32x32xf32>
    %75 = arith.subf %69, %74 : vector<32x32xf32>
    %76 = arith.mulf %75, %75 : vector<32x32xf32>
    %cst_50 = arith.constant dense<0.000000e+00> : vector<32xf32>
    %77 = vector.multi_reduction <add>, %76, %cst_50 [1] : vector<32x32xf32> to vector<32xf32>
    %78 = vector.shape_cast %77 : vector<32xf32> to vector<32x1xf32>
    %cst_51 = arith.constant 3.200000e+01 : f32
    %79 = vector.broadcast %cst_51 : f32 to vector<32x1xf32>
    %80 = arith.divf %78, %79 : vector<32x1xf32>
    %cst_52 = arith.constant 9.99999974E-6 : f32
    %81 = vector.broadcast %cst_52 : f32 to vector<32x1xf32>
    %82 = arith.addf %80, %81 : vector<32x1xf32>
    %83 = math.rsqrt %82 : vector<32x1xf32>
    %84 = vector.broadcast %83 : vector<32x1xf32> to vector<32x32xf32>
    %85 = arith.mulf %75, %84 : vector<32x32xf32>
    %86 = vector.broadcast %9 : vector<1x32xf32> to vector<32x32xf32>
    %87 = arith.mulf %85, %86 : vector<32x32xf32>
    %88 = vector.broadcast %10 : vector<1x32xf32> to vector<32x32xf32>
    %89 = arith.addf %87, %88 : vector<32x32xf32>
    %cst_53 = arith.constant dense<0.000000e+00> : vector<32x64xf32>
    %90 = tpu.matmul %89, %11, %cst_53 {dimension_numbers = #tpu.dot_dimension_numbers<[1], [0], [0], [1], [0, 0, 1, 1], [], []>} : vector<32x32xf32>, vector<32x64xf32>, vector<32x64xf32> -> vector<32x64xf32>
    %91 = vector.broadcast %12 : vector<1x64xf32> to vector<32x64xf32>
    %92 = arith.addf %90, %91 : vector<32x64xf32>
    %cst_54 = arith.constant 5.000000e-01 : f32
    %93 = vector.broadcast %cst_54 : f32 to vector<32x64xf32>
    %94 = arith.mulf %93, %92 : vector<32x64xf32>
    %cst_55 = arith.constant 0.707106769 : f32
    %95 = vector.broadcast %cst_55 : f32 to vector<32x64xf32>
    %96 = arith.mulf %92, %95 : vector<32x64xf32>
    %97 = math.erf %96 : vector<32x64xf32>
    %cst_56 = arith.constant 1.000000e+00 : f32
    %98 = vector.broadcast %cst_56 : f32 to vector<32x64xf32>
    %99 = arith.addf %98, %97 : vector<32x64xf32>
    %100 = arith.mulf %94, %99 : vector<32x64xf32>
    %cst_57 = arith.constant dense<0.000000e+00> : vector<32x32xf32>
    %101 = tpu.matmul %100, %13, %cst_57 {dimension_numbers = #tpu.dot_dimension_numbers<[1], [0], [0], [1], [0, 0, 1, 1], [], []>} : vector<32x64xf32>, vector<64x32xf32>, vector<32x32xf32> -> vector<32x32xf32>
    %102 = vector.broadcast %14 : vector<1x32xf32> to vector<32x32xf32>
    %103 = arith.addf %101, %102 : vector<32x32xf32>
    %104 = arith.addf %89, %103 : vector<32x32xf32>
    %cst_58 = arith.constant dense<0.000000e+00> : vector<32xf32>
    %105 = vector.multi_reduction <add>, %104, %cst_58 [1] : vector<32x32xf32> to vector<32xf32>
    %106 = vector.shape_cast %105 : vector<32xf32> to vector<32x1xf32>
    %cst_59 = arith.constant 3.200000e+01 : f32
    %107 = vector.broadcast %cst_59 : f32 to vector<32x1xf32>
    %108 = arith.divf %106, %107 : vector<32x1xf32>
    %109 = vector.broadcast %108 : vector<32x1xf32> to vector<32x32xf32>
    %110 = arith.subf %104, %109 : vector<32x32xf32>
    %111 = arith.mulf %110, %110 : vector<32x32xf32>
    %cst_60 = arith.constant dense<0.000000e+00> : vector<32xf32>
    %112 = vector.multi_reduction <add>, %111, %cst_60 [1] : vector<32x32xf32> to vector<32xf32>
    %113 = vector.shape_cast %112 : vector<32xf32> to vector<32x1xf32>
    %cst_61 = arith.constant 3.200000e+01 : f32
    %114 = vector.broadcast %cst_61 : f32 to vector<32x1xf32>
    %115 = arith.divf %113, %114 : vector<32x1xf32>
    %cst_62 = arith.constant 9.99999974E-6 : f32
    %116 = vector.broadcast %cst_62 : f32 to vector<32x1xf32>
    %117 = arith.addf %115, %116 : vector<32x1xf32>
    %118 = math.rsqrt %117 : vector<32x1xf32>
    %119 = vector.broadcast %118 : vector<32x1xf32> to vector<32x32xf32>
    %120 = arith.mulf %110, %119 : vector<32x32xf32>
    %121 = vector.broadcast %15 : vector<1x32xf32> to vector<32x32xf32>
    %122 = arith.mulf %120, %121 : vector<32x32xf32>
    %123 = vector.broadcast %16 : vector<1x32xf32> to vector<32x32xf32>
    %124 = arith.addf %122, %123 : vector<32x32xf32>
    %cst_63 = arith.constant dense<0.000000e+00> : vector<32x128xf32>
    %125 = tpu.matmul %124, %2, %cst_63 {dimension_numbers = #tpu.dot_dimension_numbers<[1], [0], [0], [1], [0, 0, 1, 1], [], []>} : vector<32x32xf32>, vector<32x128xf32>, vector<32x128xf32> -> vector<32x128xf32>
    %126 = vector.broadcast %3 : vector<1x128xf32> to vector<32x128xf32>
    %127 = arith.addf %125, %126 : vector<32x128xf32>
    %128 = vector.extract_strided_slice %127 {offsets = [0, 0], sizes = [32, 32], strides = [1, 1]} : vector<32x128xf32> to vector<32x32xf32>
    %129 = vector.extract_strided_slice %127 {offsets = [0, 32], sizes = [32, 32], strides = [1, 1]} : vector<32x128xf32> to vector<32x32xf32>
    %130 = vector.broadcast %1 : vector<32x1xf32> to vector<32x32xf32>
    %131 = arith.mulf %129, %130 : vector<32x32xf32>
    %132 = vector.extract_strided_slice %127 {offsets = [0, 64], sizes = [32, 32], strides = [1, 1]} : vector<32x128xf32> to vector<32x32xf32>
    %133 = vector.broadcast %1 : vector<32x1xf32> to vector<32x32xf32>
    %134 = arith.mulf %132, %133 : vector<32x32xf32>
    %135 = vector.extract_strided_slice %128 {offsets = [0, 0], sizes = [16, 32], strides = [1, 1]} : vector<32x32xf32> to vector<16x32xf32>
    %136 = vector.extract_strided_slice %131 {offsets = [0, 0], sizes = [16, 32], strides = [1, 1]} : vector<32x32xf32> to vector<16x32xf32>
    %137 = vector.extract_strided_slice %134 {offsets = [0, 0], sizes = [16, 32], strides = [1, 1]} : vector<32x32xf32> to vector<16x32xf32>
    %cst_64 = arith.constant dense<0.000000e+00> : vector<32x32xf32>
    %138 = tpu.matmul %4, %136, %cst_64 {dimension_numbers = #tpu.dot_dimension_numbers<[1], [0], [0], [1], [0, 0, 1, 1], [], []>} : vector<32x16xf32>, vector<16x32xf32>, vector<32x32xf32> -> vector<32x32xf32>
    %139 = arith.mulf %138, %5 : vector<32x32xf32>
    %cst_65 = arith.constant dense<0.000000e+00> : vector<32x32xf32>
    %140 = tpu.matmul %4, %137, %cst_65 {dimension_numbers = #tpu.dot_dimension_numbers<[1], [0], [0], [1], [0, 0, 1, 1], [], []>} : vector<32x16xf32>, vector<16x32xf32>, vector<32x32xf32> -> vector<32x32xf32>
    %141 = arith.mulf %140, %5 : vector<32x32xf32>
    %cst_66 = arith.constant dense<0.000000e+00> : vector<16x32xf32>
    %142 = tpu.matmul %135, %139, %cst_66 {dimension_numbers = #tpu.dot_dimension_numbers<[1], [1], [0], [0], [0, 0, 1, 0], [], []>} : vector<16x32xf32>, vector<32x32xf32>, vector<16x32xf32> -> vector<16x32xf32>
    %cst_67 = arith.constant 0.353553385 : f32
    %143 = vector.broadcast %cst_67 : f32 to vector<16x32xf32>
    %144 = arith.mulf %142, %143 : vector<16x32xf32>
    %cst_68 = arith.constant dense<0xFF800000> : vector<16xf32>
    %145 = vector.multi_reduction <maximumf>, %144, %cst_68 [1] : vector<16x32xf32> to vector<16xf32>
    %146 = vector.shape_cast %145 : vector<16xf32> to vector<16x1xf32>
    %147 = vector.broadcast %146 : vector<16x1xf32> to vector<16x32xf32>
    %148 = arith.subf %144, %147 : vector<16x32xf32>
    %149 = math.exp %148 : vector<16x32xf32>
    %cst_69 = arith.constant dense<0.000000e+00> : vector<16x32xf32>
    %150 = tpu.matmul %149, %6, %cst_69 {dimension_numbers = #tpu.dot_dimension_numbers<[1], [0], [0], [1], [0, 0, 1, 1], [], []>} : vector<16x32xf32>, vector<32x32xf32>, vector<16x32xf32> -> vector<16x32xf32>
    %151 = tpu.reciprocal %150 {approx = true} : vector<16x32xf32> -> vector<16x32xf32>
    %152 = arith.mulf %149, %151 : vector<16x32xf32>
    %cst_70 = arith.constant dense<0.000000e+00> : vector<16x32xf32>
    %153 = tpu.matmul %152, %141, %cst_70 {dimension_numbers = #tpu.dot_dimension_numbers<[1], [0], [0], [1], [0, 0, 1, 1], [], []>} : vector<16x32xf32>, vector<32x32xf32>, vector<16x32xf32> -> vector<16x32xf32>
    %154 = vector.extract_strided_slice %128 {offsets = [16, 0], sizes = [16, 32], strides = [1, 1]} : vector<32x32xf32> to vector<16x32xf32>
    %155 = vector.extract_strided_slice %131 {offsets = [16, 0], sizes = [16, 32], strides = [1, 1]} : vector<32x32xf32> to vector<16x32xf32>
    %156 = vector.extract_strided_slice %134 {offsets = [16, 0], sizes = [16, 32], strides = [1, 1]} : vector<32x32xf32> to vector<16x32xf32>
    %cst_71 = arith.constant dense<0.000000e+00> : vector<32x32xf32>
    %157 = tpu.matmul %4, %155, %cst_71 {dimension_numbers = #tpu.dot_dimension_numbers<[1], [0], [0], [1], [0, 0, 1, 1], [], []>} : vector<32x16xf32>, vector<16x32xf32>, vector<32x32xf32> -> vector<32x32xf32>
    %158 = arith.mulf %157, %5 : vector<32x32xf32>
    %cst_72 = arith.constant dense<0.000000e+00> : vector<32x32xf32>
    %159 = tpu.matmul %4, %156, %cst_72 {dimension_numbers = #tpu.dot_dimension_numbers<[1], [0], [0], [1], [0, 0, 1, 1], [], []>} : vector<32x16xf32>, vector<16x32xf32>, vector<32x32xf32> -> vector<32x32xf32>
    %160 = arith.mulf %159, %5 : vector<32x32xf32>
    %cst_73 = arith.constant dense<0.000000e+00> : vector<16x32xf32>
    %161 = tpu.matmul %154, %158, %cst_73 {dimension_numbers = #tpu.dot_dimension_numbers<[1], [1], [0], [0], [0, 0, 1, 0], [], []>} : vector<16x32xf32>, vector<32x32xf32>, vector<16x32xf32> -> vector<16x32xf32>
    %cst_74 = arith.constant 0.353553385 : f32
    %162 = vector.broadcast %cst_74 : f32 to vector<16x32xf32>
    %163 = arith.mulf %161, %162 : vector<16x32xf32>
    %cst_75 = arith.constant dense<0xFF800000> : vector<16xf32>
    %164 = vector.multi_reduction <maximumf>, %163, %cst_75 [1] : vector<16x32xf32> to vector<16xf32>
    %165 = vector.shape_cast %164 : vector<16xf32> to vector<16x1xf32>
    %166 = vector.broadcast %165 : vector<16x1xf32> to vector<16x32xf32>
    %167 = arith.subf %163, %166 : vector<16x32xf32>
    %168 = math.exp %167 : vector<16x32xf32>
    %cst_76 = arith.constant dense<0.000000e+00> : vector<16x32xf32>
    %169 = tpu.matmul %168, %6, %cst_76 {dimension_numbers = #tpu.dot_dimension_numbers<[1], [0], [0], [1], [0, 0, 1, 1], [], []>} : vector<16x32xf32>, vector<32x32xf32>, vector<16x32xf32> -> vector<16x32xf32>
    %170 = tpu.reciprocal %169 {approx = true} : vector<16x32xf32> -> vector<16x32xf32>
    %171 = arith.mulf %168, %170 : vector<16x32xf32>
    %cst_77 = arith.constant dense<0.000000e+00> : vector<16x32xf32>
    %172 = tpu.matmul %171, %160, %cst_77 {dimension_numbers = #tpu.dot_dimension_numbers<[1], [0], [0], [1], [0, 0, 1, 1], [], []>} : vector<16x32xf32>, vector<32x32xf32>, vector<16x32xf32> -> vector<16x32xf32>
    %173 = tpu.concatenate %153, %172 in 0 : vector<16x32xf32>, vector<16x32xf32> -> vector<32x32xf32>
    %cst_78 = arith.constant dense<0.000000e+00> : vector<32x32xf32>
    %174 = tpu.matmul %173, %7, %cst_78 {dimension_numbers = #tpu.dot_dimension_numbers<[1], [0], [0], [1], [0, 0, 1, 1], [], []>} : vector<32x32xf32>, vector<32x32xf32>, vector<32x32xf32> -> vector<32x32xf32>
    %175 = vector.broadcast %8 : vector<1x32xf32> to vector<32x32xf32>
    %176 = arith.addf %174, %175 : vector<32x32xf32>
    %177 = arith.addf %124, %176 : vector<32x32xf32>
    %cst_79 = arith.constant dense<0.000000e+00> : vector<32xf32>
    %178 = vector.multi_reduction <add>, %177, %cst_79 [1] : vector<32x32xf32> to vector<32xf32>
    %179 = vector.shape_cast %178 : vector<32xf32> to vector<32x1xf32>
    %cst_80 = arith.constant 3.200000e+01 : f32
    %180 = vector.broadcast %cst_80 : f32 to vector<32x1xf32>
    %181 = arith.divf %179, %180 : vector<32x1xf32>
    %182 = vector.broadcast %181 : vector<32x1xf32> to vector<32x32xf32>
    %183 = arith.subf %177, %182 : vector<32x32xf32>
    %184 = arith.mulf %183, %183 : vector<32x32xf32>
    %cst_81 = arith.constant dense<0.000000e+00> : vector<32xf32>
    %185 = vector.multi_reduction <add>, %184, %cst_81 [1] : vector<32x32xf32> to vector<32xf32>
    %186 = vector.shape_cast %185 : vector<32xf32> to vector<32x1xf32>
    %cst_82 = arith.constant 3.200000e+01 : f32
    %187 = vector.broadcast %cst_82 : f32 to vector<32x1xf32>
    %188 = arith.divf %186, %187 : vector<32x1xf32>
    %cst_83 = arith.constant 9.99999974E-6 : f32
    %189 = vector.broadcast %cst_83 : f32 to vector<32x1xf32>
    %190 = arith.addf %188, %189 : vector<32x1xf32>
    %191 = math.rsqrt %190 : vector<32x1xf32>
    %192 = vector.broadcast %191 : vector<32x1xf32> to vector<32x32xf32>
    %193 = arith.mulf %183, %192 : vector<32x32xf32>
    %194 = vector.broadcast %9 : vector<1x32xf32> to vector<32x32xf32>
    %195 = arith.mulf %193, %194 : vector<32x32xf32>
    %196 = vector.broadcast %10 : vector<1x32xf32> to vector<32x32xf32>
    %197 = arith.addf %195, %196 : vector<32x32xf32>
    %cst_84 = arith.constant dense<0.000000e+00> : vector<32x64xf32>
    %198 = tpu.matmul %197, %11, %cst_84 {dimension_numbers = #tpu.dot_dimension_numbers<[1], [0], [0], [1], [0, 0, 1, 1], [], []>} : vector<32x32xf32>, vector<32x64xf32>, vector<32x64xf32> -> vector<32x64xf32>
    %199 = vector.broadcast %12 : vector<1x64xf32> to vector<32x64xf32>
    %200 = arith.addf %198, %199 : vector<32x64xf32>
    %cst_85 = arith.constant 5.000000e-01 : f32
    %201 = vector.broadcast %cst_85 : f32 to vector<32x64xf32>
    %202 = arith.mulf %201, %200 : vector<32x64xf32>
    %cst_86 = arith.constant 0.707106769 : f32
    %203 = vector.broadcast %cst_86 : f32 to vector<32x64xf32>
    %204 = arith.mulf %200, %203 : vector<32x64xf32>
    %205 = math.erf %204 : vector<32x64xf32>
    %cst_87 = arith.constant 1.000000e+00 : f32
    %206 = vector.broadcast %cst_87 : f32 to vector<32x64xf32>
    %207 = arith.addf %206, %205 : vector<32x64xf32>
    %208 = arith.mulf %202, %207 : vector<32x64xf32>
    %cst_88 = arith.constant dense<0.000000e+00> : vector<32x32xf32>
    %209 = tpu.matmul %208, %13, %cst_88 {dimension_numbers = #tpu.dot_dimension_numbers<[1], [0], [0], [1], [0, 0, 1, 1], [], []>} : vector<32x64xf32>, vector<64x32xf32>, vector<32x32xf32> -> vector<32x32xf32>
    %210 = vector.broadcast %14 : vector<1x32xf32> to vector<32x32xf32>
    %211 = arith.addf %209, %210 : vector<32x32xf32>
    %212 = arith.addf %197, %211 : vector<32x32xf32>
    %cst_89 = arith.constant dense<0.000000e+00> : vector<32xf32>
    %213 = vector.multi_reduction <add>, %212, %cst_89 [1] : vector<32x32xf32> to vector<32xf32>
    %214 = vector.shape_cast %213 : vector<32xf32> to vector<32x1xf32>
    %cst_90 = arith.constant 3.200000e+01 : f32
    %215 = vector.broadcast %cst_90 : f32 to vector<32x1xf32>
    %216 = arith.divf %214, %215 : vector<32x1xf32>
    %217 = vector.broadcast %216 : vector<32x1xf32> to vector<32x32xf32>
    %218 = arith.subf %212, %217 : vector<32x32xf32>
    %219 = arith.mulf %218, %218 : vector<32x32xf32>
    %cst_91 = arith.constant dense<0.000000e+00> : vector<32xf32>
    %220 = vector.multi_reduction <add>, %219, %cst_91 [1] : vector<32x32xf32> to vector<32xf32>
    %221 = vector.shape_cast %220 : vector<32xf32> to vector<32x1xf32>
    %cst_92 = arith.constant 3.200000e+01 : f32
    %222 = vector.broadcast %cst_92 : f32 to vector<32x1xf32>
    %223 = arith.divf %221, %222 : vector<32x1xf32>
    %cst_93 = arith.constant 9.99999974E-6 : f32
    %224 = vector.broadcast %cst_93 : f32 to vector<32x1xf32>
    %225 = arith.addf %223, %224 : vector<32x1xf32>
    %226 = math.rsqrt %225 : vector<32x1xf32>
    %227 = vector.broadcast %226 : vector<32x1xf32> to vector<32x32xf32>
    %228 = arith.mulf %218, %227 : vector<32x32xf32>
    %229 = vector.broadcast %15 : vector<1x32xf32> to vector<32x32xf32>
    %230 = arith.mulf %228, %229 : vector<32x32xf32>
    %231 = vector.broadcast %16 : vector<1x32xf32> to vector<32x32xf32>
    %232 = arith.addf %230, %231 : vector<32x32xf32>
    %c0_94 = arith.constant 0 : index
    %c0_95 = arith.constant 0 : index
    %233 = vector.load %arg17[%c0_94, %c0_95] : memref<32x32xf32, #tpu.memory_space<vmem>>, vector<32x32xf32>
    tpu.vector_store %arg17[%c0_94, %c0_95], %232 {strides = array<i32>} : memref<32x32xf32, #tpu.memory_space<vmem>>, vector<32x32xf32>,
    return
  }
}

</mosaic_0001>

<bundles_post_ra>
// kernel: tpu_custom_call.1
= control target key start
LH: loop header
LB: loop body
LE: loop exit
PB: predicated region body
PF: predicated region fallthrough
CT: control target
= control target key end

     0   :  { %s3418_s0 = inlined_call_operand.vmem [shape: f32[32,32], index: 0, kind: input, shape index: {}]   ;;  %s3419_s1 = inlined_call_operand.vmem [shape: f32[32,1], index: 1, kind: input, shape index: {}]   ;;  %s3420_s2 = inlined_call_operand.vmem [shape: f32[32,128], index: 2, kind: input, shape index: {}]   ;;  %s3421_s3 = inlined_call_operand.vmem [shape: f32[1,128], index: 3, kind: input, shape index: {}]   ;;  %s3422_s4 = inlined_call_operand.vmem [shape: f32[32,16], index: 4, kind: input, shape index: {}]   ;;  %s3423_s5 = inlined_call_operand.vmem [shape: f32[32,32], index: 5, kind: input, shape index: {}]   ;;  %s3424_s6 = inlined_call_operand.vmem [shape: f32[32,32], index: 6, kind: input, shape index: {}]   ;;  %s3425_s7 = inlined_call_operand.hbm [shape: f32[32,32], index: 7, kind: input, shape index: {}]   ;;  %s3426_s8 = inlined_call_operand.vmem [shape: f32[1,32], index: 8, kind: input, shape index: {}]   ;;  %s3427_s9 = inlined_call_operand.vmem [shape: f32[1,32], index: 9, kind: input, shape index: {}]   ;;  %s3428_s10 = inlined_call_operand.vmem [shape: f32[1,32], index: 10, kind: input, shape index: {}]   ;;  %s3429_s11 = inlined_call_operand.hbm [shape: f32[32,64], index: 11, kind: input, shape index: {}]   ;;  %s3430_s12 = inlined_call_operand.vmem [shape: f32[1,64], index: 12, kind: input, shape index: {}]   ;;  %s3431_s13 = inlined_call_operand.vmem [shape: f32[64,32], index: 13, kind: input, shape index: {}]   ;;  %s3432_s14 = inlined_call_operand.vmem [shape: f32[1,32], index: 14, kind: input, shape index: {}]   ;;  %s3433_s15 = inlined_call_operand.vmem [shape: f32[1,32], index: 15, kind: input, shape index: {}]   ;;  %s3434_s16 = inlined_call_operand.vmem [shape: f32[1,32], index: 16, kind: input, shape index: {}]   ;;  %s3435_s17 = inlined_call_operand.hbm [shape: f32[32,32], index: 17, kind: output, shape index: {}]  }
   0x1   :  { %3438 = sst [smem:[#allocation11_spill]] %s3418_s0 }
   0x2   :  { %3439 = sst [smem:[#allocation12_spill]] %s3419_s1 }
   0x3   :  { %22 = vsyncpa [#allocation3], 0 }
   0x4   :  { %23 = vsyncpa [#allocation6], 0 }
   0x5   :  { %24 = vsyncpa [#allocation4], 0  ;;  %s43_s26 = sshll.u32 %s3425_s7, 4  ;;  %s2462_s27 = smov [#allocation2]   ;;  %s44_s26 = int_to_ptr.hbm [resolvable:$true] %s43_s26 }
   0x6   :  { %s45_s28 = sshll.u32 %s2462_s27, 4  ;;  %s62_s30 = sshll.u32 %s3429_s11, 4  ;;  %s46_s28 = int_to_ptr.vmem [resolvable:$true] %s45_s28  ;;  %s63_s30 = int_to_ptr.hbm [resolvable:$true] %s62_s30 }
   0x7   :  { %s2463_s18 = smov 128   ;;  %s2464_s19 = smov 8  }
   0x8   :  { %51 = dma.hbm_to_vmem [thread:$0]  %s44_s26, 512, %s46_s28, [#allocation3], %s2463_s18, %s2463_s18, %s2464_s19  }
   0x9   :  { %s2465_s1 = smov [#allocation5]  }
   0xa   :  { %s64_s20 = sshll.u32 %s2465_s1, 4  ;;  %s65_s20 = int_to_ptr.vmem [resolvable:$true] %s64_s20 }
   0xb   :  { %70 = dma.hbm_to_vmem [thread:$0]  %s63_s30, 512, %s65_s20, [#allocation6], %s2463_s18, %s2463_s18, %s2464_s19  }
   0xc   :  { %2456 = dma.done.wait [#allocation3], 512  }
   0xd   :  { %2457 = vsyncadd [#allocation3], 4294966784 }
   0xe   :  { %2458 = dma.done.wait [#allocation6], 512  }
   0xf   :  { %2459 = vsyncadd [#allocation6], 4294966784  ;;  %v2466_v0 = vmov 0   ;;  %v2576_v1 = vld [vmem:[%s3420_s2 + $0x18] sm:$0xff]  ;;  %v2581_v2 = vld [vmem:[%s3420_s2 + $0x10] sm:$0xff]  ;;  %s3440_s25 = sld [smem:[#allocation12_spill]] }
  0x10   :  { %2228 = vset.pattern.permute.xlu0 %v2466_v0  ;;  %2239 = vset.pattern.permute.xlu1 %v2466_v0  ;;  %v2590_v4 = vld [vmem:[%s3420_s2 + $0x8] sm:$0xff]  ;;  %v2596_v5 = vld [vmem:[%s3420_s2] sm:$0xff]  ;;  %s3441_s1 = sld [smem:[#allocation11_spill]]  ;;  %vm140_vm0 = vcmask 261120   ;;  %s2467_s0 = smov 96   ;;  %vm214_vm1 = vcmask 130048  }
  0x11   :  { %165 = vmatpush.msra.mxu0 %v2576_v1  ;;  %v2639_v14 = vld [vmem:[%s3421_s3] ss:$0 sm:$0xff]  ;;  %s2468_s30 = smov 64   ;;  %v2662_v30 = vld [vmem:[%s3422_s4 + $0x8] sm:$0xff]  ;;  %v2671_v31 = vld [vmem:[%s3422_s4 + $0x10] sm:$0xff]  ;;  %vm993_vm15 = vcmask 523264  }
  0x12   :  { %v2655_v26 = vld [vmem:[%s3422_s4] sm:$0xff]  ;;  %v2680_v32 = vld [vmem:[%s3422_s4 + $0x18] sm:$0xff]  ;;  %v2697_v39 = vld [vmem:[%s3423_s5 + $0x10] sm:$0xff]  ;;  %s2089_s27 = sshll.u32 %s3435_s17, 4  ;;  %s2090_s27 = int_to_ptr.hbm [resolvable:$true] %s2089_s27 }
  0x13   :  { %166 = vmatpush.msra.mxu0 %v2581_v2  ;;  %v2691_v36 = vld [vmem:[%s3423_s5 + $0x18] sm:$0xff]  ;;  %v2705_v41 = vld [vmem:[%s3423_s5 + $0x8] sm:$0xff]  ;;  %v2713_v43 = vld [vmem:[%s3423_s5] sm:$0xff] }
  0x14   :  { %v2743_v63 = vld [vmem:[%s3424_s6 + $0x18] sm:$0xff]  ;;  %v2749_v0 = vld [vmem:[%s3424_s6 + $0x10] sm:$0xff] }
  0x15   :  { %v94_v3 = vld [vmem:[%s3440_s25 + $0x8] sm:$0xff]  ;;  %167 = vmatpush.msra.mxu0 %v2590_v4  ;;  %v93_v7 = vld [vmem:[%s3440_s25] sm:$0xff]  ;;  %v96_v9 = vld [vmem:[%s3440_s25 + $0x18] sm:$0xff] }
  0x16   :  { %189 = vperm.xlu0 %2228, %v94_v3   ;;  %v2601_v6 = vld [vmem:[%s3441_s1] sm:$0xff]  ;;  %v2613_v8 = vld [vmem:[%s3441_s1 + $0x8] sm:$0xff]  ;;  %v2623_v10 = vld [vmem:[%s3441_s1 + $0x10] sm:$0xff] }
  0x17   :  { %168 = vmatpush.msra.mxu0 %v2596_v5  ;;  %v2630_v11 = vld [vmem:[%s3441_s1 + $0x18] sm:$0xff]  ;;  %v95_v22 = vld [vmem:[%s3440_s25 + $0x10] sm:$0xff]  ;;  %v2757_v3 = vld [vmem:[%s3424_s6 + $0x8] sm:$0xff] }
  0x18   :  { %2103 = vmatmul.msk.f32.vlgmr.msra.gmra.mxu0 %vm140_vm0, %v2601_v6 }
  0x1e   :  { %184 = vperm.xlu0 %2228, %v93_v7  }
  0x20   :  { %2104 = vmatmul.msk.f32.gmra.mxu0 %vm140_vm0, %v2613_v8 }
  0x26   :  { %199 = vperm.xlu0 %2228, %v96_v9  }
  0x28   :  { %2105 = vmatmul.msk.f32.gmra.mxu0 %vm140_vm0, %v2623_v10 }
  0x30   :  { %2106 = vmatmul.msk.f32.gmra.mxu0 %vm140_vm0, %v2630_v11 }
  0x88   :  { %v2634_v12 = vpop.permute.xlu0 %189 }
  0x90   :  { %v2643_v18 = vpop.permute.xlu0 %184 }
  0x95   :  { %v170_v13 = vpop.f32.mrf.mxu0 }
  0x96   :  { %v171_v15 = vadd.f32 %v2639_v14, %v170_v13 }
  0x98   :  { %v202_v19 = vmul.f32 %v2643_v18, %v171_v15  ;;  %v2734_v57 = vpop.permute.xlu0 %199 }
  0x9d   :  { %v173_v16 = vpop.f32.mrf.mxu0 }
  0x9e   :  { %v174_v17 = vadd.f32 %v2639_v14, %v173_v16 }
  0xa0   :  { %v203_v20 = vmul.f32 %v2634_v12, %v174_v17 }
  0xa2   :  { %v2229_v21 = vpack.i.bf16 %v202_v19, %v203_v20 }
  0xa4   :  { %2230 = vrot.lane.b32.xlu1 %v2229_v21, %s2467_s0 }
  0xa5   :  { %v176_v51 = vpop.f32.mrf.mxu0 }
  0xa6   :  { %v2725_v53 = vadd.f32 %v2639_v14, %v176_v51 }
  0xac   :  { %2235 = vrot.lane.b32.xlu1 %v2229_v21, %s2468_s30 }
  0xad   :  { %v179_v52 = vpop.f32.mrf.mxu0 }
  0xae   :  { %v2730_v55 = vadd.f32 %v2639_v14, %v179_v52  ;;  %v2766_v14 = vld [vmem:[%s3424_s6] sm:$0xff] }
  0xb0   :  { %v205_v58 = vmul.f32 %v2734_v57, %v2730_v55 }
  0xb4   :  { %194 = vperm.xlu1 %2239, %v95_v22  }
 0x116   :  { %v2231_v23 = vpop.permute.xlu1 %2230 }
 0x117   :  { %v2232_v24 = vunpack.i.l.bf16 %v2231_v23  ;;  %v2233_v25 = vunpack.i.h.bf16 %v2231_v23 }
 0x119   :  { %241 = vmatpush.msra.mxu1 %v2232_v24 }
 0x11b   :  { %242 = vmatpush.msra.mxu1 %v2233_v25 }
 0x11c   :  { %2107 = vmatmul.msk.f32.vlgmr.msra.gmra.mxu1 %vm214_vm1, %v2655_v26 }
 0x11e   :  { %v2236_v27 = vpop.permute.xlu1 %2235 }
 0x11f   :  { %v2237_v28 = vunpack.i.l.bf16 %v2236_v27  ;;  %v2238_v29 = vunpack.i.h.bf16 %v2236_v27 }
 0x121   :  { %280 = vmatpush.msra.mxu2 %v2237_v28 }
 0x123   :  { %281 = vmatpush.msra.mxu2 %v2238_v29 }
 0x124   :  { %2108 = vmatmul.msk.f32.gmra.mxu1 %vm214_vm1, %v2662_v30  ;;  %2111 = vmatmul.msk.f32.vlgmr.msra.gmra.mxu2 %vm214_vm1, %v2655_v26 }
 0x126   :  { %v2727_v54 = vpop.permute.xlu1 %194 }
 0x127   :  { %v204_v56 = vmul.f32 %v2727_v54, %v2725_v53 }
 0x129   :  { %v2240_v59 = vpack.i.bf16 %v204_v56, %v205_v58 }
 0x12c   :  { %2109 = vmatmul.msk.f32.gmra.mxu1 %vm214_vm1, %v2671_v31  ;;  %2112 = vmatmul.msk.f32.gmra.mxu2 %vm214_vm1, %v2662_v30 }
 0x134   :  { %2110 = vmatmul.msk.f32.gmra.mxu1 %vm214_vm1, %v2680_v32  ;;  %2113 = vmatmul.msk.f32.gmra.mxu2 %vm214_vm1, %v2671_v31 }
 0x13c   :  { %2114 = vmatmul.msk.f32.gmra.mxu2 %vm214_vm1, %v2680_v32 }
 0x199   :  { %v244_v33 = vpop.f32.mrf.mxu1 }
 0x19a   :  { %v256_v44 = vmul.f32 %v244_v33, %v2713_v43 }
 0x1a1   :  { %v247_v34 = vpop.f32.mrf.mxu1 }
 0x1a2   :  { %v257_v42 = vmul.f32 %v247_v34, %v2705_v41 }
 0x1a7   :  { %v283_v60 = vpop.f32.mrf.mxu2 }
 0x1a8   :  { %v295_v16 = vmul.f32 %v283_v60, %v2713_v43 }
 0x1a9   :  { %v250_v35 = vpop.f32.mrf.mxu1 }
 0x1aa   :  { %v258_v40 = vmul.f32 %v250_v35, %v2697_v39 }
 0x1af   :  { %v286_v61 = vpop.f32.mrf.mxu2 }
 0x1b1   :  { %v253_v37 = vpop.f32.mrf.mxu1 }
 0x1b2   :  { %v259_v38 = vmul.f32 %v253_v37, %v2691_v36 }
 0x1b4   :  { %2115 = vmatpush.xpose.msk.msrb.mxu1 %vm140_vm0, %v259_v38  ;;  %2215 = vmatpush.xpose.msk.msra.mxu3 %vm140_vm0, %v259_v38 }
 0x1b7   :  { %v289_v62 = vpop.f32.mrf.mxu2 }
 0x1b8   :  { %2116 = vmatpush.xpose.msk.msrb.mxu1 %vm140_vm0, %v258_v40  ;;  %2216 = vmatpush.xpose.msk.msra.mxu3 %vm140_vm0, %v258_v40  ;;  %v297_v9 = vmul.f32 %v289_v62, %v2697_v39  ;;  %v117_v62 = vld [vmem:[#allocation2 + $0x18] sm:$0xff] }
 0x1bc   :  { %2117 = vmatpush.xpose.msk.msrb.mxu1 %vm140_vm0, %v257_v42  ;;  %2217 = vmatpush.xpose.msk.msra.mxu3 %vm140_vm0, %v257_v42 }
 0x1bf   :  { %v292_v7 = vpop.f32.mrf.mxu2 }
 0x1c0   :  { %2118 = vmatpush.xpose.msk.msrb.mxu1 %vm140_vm0, %v256_v44  ;;  %2218 = vmatpush.xpose.msk.msra.mxu3 %vm140_vm0, %v256_v44  ;;  %v298_v13 = vmul.f32 %v292_v7, %v2691_v36  ;;  %v116_v7 = vld [vmem:[#allocation2 + $0x10] sm:$0xff] }
 0x1c2   :  { %405 = vmatpush.msrb.mxu2 %v298_v13  ;;  %v114_v13 = vld [vmem:[#allocation2] sm:$0xff] }
 0x1c3   :  { %2119 = vmatmul.msk.f32.vlgmr.msrb.gmra.mxu1 %vm140_vm0, %v171_v15  ;;  %2120 = vmatmul.msk.f32.vlgmr.msra.gmra.mxu3 %vm140_vm0, %v174_v17  ;;  %v296_v15 = vmul.f32 %v286_v61, %v2705_v41 }
 0x1c4   :  { %372 = vmatpush.msrb.mxu3 %v2743_v63  ;;  %569 = vmatpush.msra.mxu1 %v2743_v63 }
 0x1c5   :  { %406 = vmatpush.msrb.mxu2 %v297_v9  ;;  %v115_v9 = vld [vmem:[#allocation2 + $0x8] sm:$0xff] }
 0x1c6   :  { %373 = vmatpush.msrb.mxu3 %v2749_v0  ;;  %570 = vmatpush.msra.mxu1 %v2749_v0 }
 0x1c7   :  { %407 = vmatpush.msrb.mxu2 %v296_v15 }
 0x1c8   :  { %374 = vmatpush.msrb.mxu3 %v2757_v3  ;;  %571 = vmatpush.msra.mxu1 %v2757_v3 }
 0x1c9   :  { %408 = vmatpush.msrb.mxu2 %v295_v16 }
 0x1ca   :  { %375 = vmatpush.msrb.mxu3 %v2766_v14  ;;  %572 = vmatpush.msra.mxu1 %v2766_v14 }
 0x1cc   :  { %640 = vmatpush.msrb.mxu1 %v117_v62 }
 0x1ce   :  { %641 = vmatpush.msrb.mxu1 %v116_v7 }
 0x1d0   :  { %642 = vmatpush.msrb.mxu1 %v115_v9 }
 0x1d2   :  { %643 = vmatpush.msrb.mxu1 %v114_v13 }
 0x240   :  { %v334_v45 = vpop.f32.mrf.mxu1 }
 0x241   :  { %v340_v46 = vmul.f32 0.35355338, %v334_v45 }
 0x243   :  { %v342_v47 = vsel %vm140_vm0, %v340_v46, -inf }
 0x244   :  { %343 = vmax.xlane.f32.xlu2 %v342_v47 }
 0x246   :  { %v337_v48 = vpop.f32.mrf.mxu3 }
 0x247   :  { %v341_v49 = vmul.f32 0.35355338, %v337_v48 }
 0x249   :  { %v345_v50 = vsel %vm140_vm0, %v341_v49, -inf }
 0x24c   :  { %346 = vmax.xlane.f32.xlu2 %v345_v50 }
 0x264   :  { %2241 = vrot.lane.b32.xlu2 %v2240_v59, %s2467_s0 }
 0x26c   :  { %2246 = vrot.lane.b32.xlu2 %v2240_v59, %s2468_s30 }
 0x2b7   :  { %v344_v17 = vpop.xlane.xlu2 %343 }
 0x2b8   :  { %v348_v19 = vsub.f32 %v340_v46, %v344_v17 }
 0x2ba   :  { %v350_v20 = vmul.f32 1.442695, %v348_v19 }
 0x2bc   :  { %2278 = vpow2.f32 %v350_v20 }
 0x2bf   :  { %v347_v21 = vpop.xlane.xlu2 %346 }
 0x2c0   :  { %v349_v22 = vsub.f32 %v341_v49, %v347_v21 }
 0x2c2   :  { %v2279_v23 = vpop.eup %2278  ;;  %v352_v24 = vmul.f32 1.442695, %v349_v22 }
 0x2c3   :  { %2121 = vmatmul.msk.f32.vlgmr.msrb.gmra.mxu3 %vm140_vm0, %v2279_v23 }
 0x2c4   :  { %2280 = vpow2.f32 %v352_v24 }
 0x2c7   :  { %v2242_v25 = vpop.permute.xlu2 %2241 }
 0x2c8   :  { %v2243_v27 = vunpack.i.l.bf16 %v2242_v25  ;;  %v2244_v29 = vunpack.i.h.bf16 %v2242_v25 }
 0x2ca   :  { %v2281_v28 = vpop.eup %2280  ;;  %438 = vmatpush.msra.mxu2 %v2243_v27 }
 0x2cb   :  { %2122 = vmatmul.msk.f32.gmra.mxu3 %vm140_vm0, %v2281_v28 }
 0x2cc   :  { %439 = vmatpush.msra.mxu2 %v2244_v29 }
 0x2cf   :  { %v2247_v33 = vpop.permute.xlu2 %2246 }
 0x2d0   :  { %v2248_v34 = vunpack.i.l.bf16 %v2247_v33  ;;  %v2249_v35 = vunpack.i.h.bf16 %v2247_v33 }
 0x2d2   :  { %477 = vmatpush.msrb.mxu0 %v2248_v34 }
 0x2d4   :  { %478 = vmatpush.msrb.mxu0 %v2249_v35 }
 0x2d5   :  { %2129 = vmatmul.msk.f32.vlgmr.msrb.gmra.mxu0 %vm214_vm1, %v2655_v26 }
 0x2dd   :  { %2130 = vmatmul.msk.f32.gmra.mxu0 %vm214_vm1, %v2662_v30 }
 0x2e5   :  { %2131 = vmatmul.msk.f32.gmra.mxu0 %vm214_vm1, %v2671_v31 }
 0x2ed   :  { %2132 = vmatmul.msk.f32.gmra.mxu0 %vm214_vm1, %v2680_v32 }
 0x346   :  { %v377_v37 = vpop.f32.mrf.mxu3 }
 0x347   :  { %2282 = vrcp.f32 %v377_v37 }
 0x34d   :  { %v2283_v38 = vpop.eup %2282 }
 0x34e   :  { %v380_v40 = vpop.f32.mrf.mxu3  ;;  %v385_v42 = vmul.f32 %v2283_v38, %v2279_v23 }
 0x34f   :  { %2284 = vrcp.f32 %v380_v40  ;;  %v2469_v40 = vmov 32.0  }
 0x350   :  { %2123 = vmatmul.msk.f32.vlgmr.msrb.gmra.mxu2 %vm140_vm0, %v385_v42 }
 0x352   :  { %v480_v16 = vpop.f32.mrf.mxu0 }
 0x353   :  { %v492_v33 = vmul.f32 %v480_v16, %v2713_v43 }
 0x355   :  { %v2285_v44 = vpop.eup %2284 }
 0x356   :  { %v386_v45 = vmul.f32 %v2285_v44, %v2281_v28 }
 0x358   :  { %2124 = vmatmul.msk.f32.gmra.mxu2 %vm140_vm0, %v386_v45 }
 0x35a   :  { %v483_v22 = vpop.f32.mrf.mxu0 }
 0x35b   :  { %v493_v29 = vmul.f32 %v483_v22, %v2705_v41 }
 0x360   :  { %2125 = vmatmul.msk.f32.vlgmr.msra.gmra.mxu2 %vm214_vm1, %v2655_v26 }
 0x362   :  { %v486_v24 = vpop.f32.mrf.mxu0 }
 0x363   :  { %v494_v27 = vmul.f32 %v486_v24, %v2697_v39 }
 0x368   :  { %2126 = vmatmul.msk.f32.gmra.mxu2 %vm214_vm1, %v2662_v30 }
 0x36a   :  { %v489_v25 = vpop.f32.mrf.mxu0 }
 0x36b   :  { %v495_v28 = vmul.f32 %v489_v25, %v2691_v36 }
 0x370   :  { %2127 = vmatmul.msk.f32.gmra.mxu2 %vm214_vm1, %v2671_v31 }
 0x378   :  { %2128 = vmatmul.msk.f32.gmra.mxu2 %vm214_vm1, %v2680_v32 }
 0x3d3   :  { %v410_v46 = vpop.f32.mrf.mxu2 }
 0x3db   :  { %v413_v47 = vpop.f32.mrf.mxu2 }
 0x3e3   :  { %v441_v48 = vpop.f32.mrf.mxu2 }
 0x3e4   :  { %v453_v31 = vmul.f32 %v441_v48, %v2713_v43 }
 0x3eb   :  { %v444_v49 = vpop.f32.mrf.mxu2 }
 0x3ec   :  { %v454_v30 = vmul.f32 %v444_v49, %v2705_v41 }
 0x3f3   :  { %v447_v50 = vpop.f32.mrf.mxu2 }
 0x3f4   :  { %v455_v26 = vmul.f32 %v447_v50, %v2697_v39 }
 0x3fb   :  { %v450_v51 = vpop.f32.mrf.mxu2 }
 0x3fc   :  { %v456_v52 = vmul.f32 %v450_v51, %v2691_v36 }
 0x3fe   :  { %2133 = vmatpush.xpose.msk.msra.mxu3 %vm140_vm0, %v456_v52 }
 0x402   :  { %2134 = vmatpush.xpose.msk.msra.mxu3 %vm140_vm0, %v455_v26 }
 0x406   :  { %2135 = vmatpush.xpose.msk.msra.mxu3 %vm140_vm0, %v454_v30 }
 0x40a   :  { %2136 = vmatpush.xpose.msk.msra.mxu3 %vm140_vm0, %v453_v31 }
 0x40d   :  { %2137 = vmatmul.msk.f32.vlgmr.msra.gmra.mxu3 %vm140_vm0, %v2725_v53 }
 0x40e   :  { %602 = vmatpush.msrb.mxu3 %v495_v28 }
 0x410   :  { %603 = vmatpush.msrb.mxu3 %v494_v27 }
 0x412   :  { %604 = vmatpush.msrb.mxu3 %v493_v29 }
 0x414   :  { %605 = vmatpush.msrb.mxu3 %v492_v33 }
 0x415   :  { %2138 = vmatmul.msk.f32.gmra.mxu3 %vm140_vm0, %v2730_v55 }
 0x416   :  { %1165 = vmatpush.msra.mxu3 %v2576_v1  ;;  %v2823_v1 = vld [vmem:[%s3426_s8] ss:$0 sm:$0xff] }
 0x418   :  { %1166 = vmatpush.msra.mxu3 %v2581_v2 }
 0x41a   :  { %1167 = vmatpush.msra.mxu3 %v2590_v4 }
 0x41c   :  { %1168 = vmatpush.msra.mxu3 %v2596_v5 }
 0x490   :  { %v531_v32 = vpop.f32.mrf.mxu3 }
 0x491   :  { %v537_v56 = vmul.f32 0.35355338, %v531_v32 }
 0x493   :  { %v539_v58 = vsel %vm140_vm0, %v537_v56, -inf }
 0x494   :  { %540 = vmax.xlane.f32.xlu0 %v539_v58  ;;  %v2843_v58 = vld [vmem:[#allocation5 + $0x18] sm:$0xff] }
 0x495   :  { %797 = vmatpush.msrb.mxu2 %v2843_v58 }
 0x498   :  { %v534_v59 = vpop.f32.mrf.mxu3 }
 0x499   :  { %v538_v60 = vmul.f32 0.35355338, %v534_v59  ;;  %v2846_v59 = vld [vmem:[#allocation5 + $0x10] sm:$0xff] }
 0x49a   :  { %798 = vmatpush.msrb.mxu2 %v2846_v59 }
 0x49b   :  { %v542_v61 = vsel %vm140_vm0, %v538_v60, -inf }
 0x49c   :  { %543 = vmax.xlane.f32.xlu1 %v542_v61  ;;  %v2852_v61 = vld [vmem:[#allocation5] sm:$0xff] }
 0x507   :  { %v541_v53 = vpop.xlane.xlu0 %540 }
 0x508   :  { %v545_v55 = vsub.f32 %v537_v56, %v541_v53 }
 0x50a   :  { %v547_v15 = vmul.f32 1.442695, %v545_v55 }
 0x50c   :  { %2286 = vpow2.f32 %v547_v15 }
 0x50f   :  { %v544_v17 = vpop.xlane.xlu1 %543 }
 0x510   :  { %v546_v19 = vsub.f32 %v538_v60, %v544_v17  ;;  %v2849_v60 = vld [vmem:[#allocation5 + $0x8] sm:$0xff] }
 0x511   :  { %799 = vmatpush.msrb.mxu2 %v2849_v60 }
 0x512   :  { %v2287_v20 = vpop.eup %2286  ;;  %v549_v21 = vmul.f32 1.442695, %v546_v19 }
 0x513   :  { %2139 = vmatmul.msk.f32.vlgmr.msra.gmra.mxu1 %vm140_vm0, %v2287_v20  ;;  %800 = vmatpush.msrb.mxu2 %v2852_v61 }
 0x514   :  { %2288 = vpow2.f32 %v549_v21 }
 0x51a   :  { %v2289_v23 = vpop.eup %2288 }
 0x51b   :  { %2140 = vmatmul.msk.f32.gmra.mxu1 %vm140_vm0, %v2289_v23 }
 0x523   :  { %2143 = vmatmul.msk.f32.vlgmr.msrb.gmra.mxu1 %vm140_vm0, %v410_v46 }
 0x52b   :  { %2144 = vmatmul.msk.f32.gmra.mxu1 %vm140_vm0, %v413_v47 }
 0x590   :  { %v574_v39 = vpop.f32.mrf.mxu1 }
 0x591   :  { %2290 = vrcp.f32 %v574_v39 }
 0x597   :  { %v2291_v36 = vpop.eup %2290 }
 0x598   :  { %v582_v41 = vmul.f32 %v2291_v36, %v2287_v20  ;;  %v577_v34 = vpop.f32.mrf.mxu1  ;;  %v2866_v36 = vld [vmem:[%s3427_s9] ss:$0 sm:$0xff] }
 0x599   :  { %2292 = vrcp.f32 %v577_v34 }
 0x59a   :  { %2141 = vmatmul.msk.f32.vlgmr.msrb.gmra.mxu3 %vm140_vm0, %v582_v41  ;;  %2294 = vrcp.f32 %v2469_v40 }
 0x59b   :  { %1339 = vmatpush.msrb.mxu3 %v2743_v63 }
 0x59d   :  { %1340 = vmatpush.msrb.mxu3 %v2749_v0 }
 0x59f   :  { %v2293_v2 = vpop.eup %2292  ;;  %1341 = vmatpush.msrb.mxu3 %v2757_v3 }
 0x5a0   :  { %v645_v4 = vpop.f32.mrf.mxu1  ;;  %v583_v5 = vmul.f32 %v2293_v2, %v2289_v23  ;;  %v2295_v42 = vpop.eup %2294 }
 0x5a1   :  { %v646_v43 = vadd.f32 %v2823_v1, %v645_v4  ;;  %1342 = vmatpush.msrb.mxu3 %v2766_v14  ;;  %v674_v44 = vmul.f32 32.0, %v2295_v42  ;;  %vm678_vm2 = vweird.f32 %v2295_v42 }
 0x5a2   :  { %2142 = vmatmul.msk.f32.gmra.mxu3 %vm140_vm0, %v583_v5 }
 0x5a3   :  { %v657_v63 = vadd.f32 %v646_v43, %v2601_v6  ;;  %v675_v14 = vsub.f32 1.0, %v674_v44 }
 0x5a5   :  { %v661_v35 = vsel %vm140_vm0, %v657_v63, 0.0  ;;  %v676_v45 = vmul.f32 %v2295_v42, %v675_v14 }
 0x5a6   :  { %662 = vadd.xlane.f32.xlu2 %v661_v35 }
 0x5a7   :  { %v677_v46 = vadd.f32 %v2295_v42, %v676_v45 }
 0x5a8   :  { %v648_v37 = vpop.f32.mrf.mxu1 }
 0x5a9   :  { %v649_v38 = vadd.f32 %v2823_v1, %v648_v37  ;;  %v2835_v6 = vsel %vm678_vm2, %v2295_v42, %v677_v46 }
 0x5ab   :  { %v658_v0 = vadd.f32 %v649_v38, %v2613_v8 }
 0x5ad   :  { %v664_v3 = vsel %vm140_vm0, %v658_v0, 0.0 }
 0x5ae   :  { %665 = vadd.xlane.f32.xlu0 %v664_v3 }
 0x619   :  { %v663_v47 = vpop.xlane.xlu2 %662 }
 0x61a   :  { %v680_v48 = vmul.f32 %v2835_v6, %v663_v47 }
 0x61c   :  { %v684_v49 = vsub.f32 %v657_v63, %v680_v48 }
 0x61d   :  { %v607_v50 = vpop.f32.mrf.mxu3 }
 0x61e   :  { %2145 = vmatmul.msk.f32.gmra.mxu1 %vm140_vm0, %v607_v50  ;;  %v688_v8 = vmul.f32 %v684_v49, %v684_v49  ;;  %v2900_v50 = vld [vmem:[%s3430_s12] ss:$0 sm:$0xff] }
 0x620   :  { %v692_v51 = vsel %vm140_vm0, %v688_v8, 0.0 }
 0x621   :  { %v666_v52 = vpop.xlane.xlu0 %665  ;;  %693 = vadd.xlane.f32.xlu1 %v692_v51 }
 0x622   :  { %v681_v26 = vmul.f32 %v2835_v6, %v666_v52 }
 0x624   :  { %v685_v30 = vsub.f32 %v658_v0, %v681_v26 }
 0x625   :  { %v610_v31 = vpop.f32.mrf.mxu3 }
 0x626   :  { %2146 = vmatmul.msk.f32.gmra.mxu1 %vm140_vm0, %v610_v31  ;;  %v689_v32 = vmul.f32 %v685_v30, %v685_v30 }
 0x628   :  { %v695_v56 = vsel %vm140_vm0, %v689_v32, 0.0  ;;  %v2913_v32 = vld [vmem:[%s3431_s13 + $0x38] sm:$0xff] }
 0x629   :  { %696 = vadd.xlane.f32.xlu0 %v695_v56  ;;  %1014 = vmatpush.msra.mxu0 %v2913_v32 }
 0x694   :  { %v694_v62 = vpop.xlane.xlu1 %693 }
 0x695   :  { %v704_v7 = vmul.f32 %v694_v62, %v2835_v6 }
 0x697   :  { %v708_v9 = vadd.f32 1e-05, %v704_v7 }
 0x699   :  { %2296 = vrsqrt.f32 %v708_v9  ;;  %vm718_vm4 = vweird.f32 %v708_v9 }
 0x69b   :  { %v651_v13 = vpop.f32.mrf.mxu1 }
 0x69c   :  { %v652_v53 = vadd.f32 %v2823_v1, %v651_v13  ;;  %v697_v55 = vpop.xlane.xlu0 %696 }
 0x69d   :  { %v705_v15 = vmul.f32 %v697_v55, %v2835_v6 }
 0x69e   :  { %v659_v16 = vadd.f32 %v652_v53, %v2623_v10 }
 0x69f   :  { %v2297_v17 = vpop.eup %2296  ;;  %v709_v19 = vadd.f32 1e-05, %v705_v15  ;;  %v2931_v15 = vld [vmem:[%s3431_s13 + $0x28] sm:$0xff] }
 0x6a0   :  { %v713_v20 = vmul.f32 %v2297_v17, %v708_v9  ;;  %v667_v21 = vsel %vm140_vm0, %v659_v16, 0.0  ;;  %vm719_vm3 = vweird.f32 %v2297_v17  ;;  %v2922_v9 = vld [vmem:[%s3431_s13 + $0x30] sm:$0xff] }
 0x6a1   :  { %2298 = vrsqrt.f32 %v709_v19  ;;  %668 = vadd.xlane.f32.xlu1 %v667_v21  ;;  %vm720_vm5 = vmor %vm718_vm4, %vm719_vm3  ;;  %vm728_vm7 = vweird.f32 %v709_v19  ;;  %1015 = vmatpush.msra.mxu0 %v2922_v9 }
 0x6a2   :  { %v714_v22 = vmul.f32 %v2297_v17, %v713_v20  ;;  %v2939_v20 = vld [vmem:[%s3431_s13 + $0x20] sm:$0xff] }
 0x6a3   :  { %v654_v23 = vpop.f32.mrf.mxu1  ;;  %1016 = vmatpush.msra.mxu0 %v2931_v15 }
 0x6a4   :  { %v715_v24 = vmul.f32 0.5, %v714_v22  ;;  %v655_v25 = vadd.f32 %v2823_v1, %v654_v23 }
 0x6a5   :  { %1017 = vmatpush.msra.mxu0 %v2939_v20 }
 0x6a6   :  { %v716_v27 = vsub.f32 1.5, %v715_v24  ;;  %v660_v28 = vadd.f32 %v655_v25, %v2630_v11  ;;  %v2871_v11 = vld [vmem:[%s3428_s10] ss:$0 sm:$0xff]  ;;  %v2945_v24 = vld [vmem:[%s3431_s13 + $0x18] sm:$0xff] }
 0x6a7   :  { %v2299_v29 = vpop.eup %2298  ;;  %1018 = vmatpush.msra.mxu0 %v2945_v24 }
 0x6a8   :  { %v717_v33 = vmul.f32 %v2297_v17, %v716_v27  ;;  %v723_v10 = vmul.f32 %v2299_v29, %v709_v19  ;;  %v670_v39 = vsel %vm140_vm0, %v660_v28, 0.0  ;;  %vm729_vm6 = vweird.f32 %v2299_v29 }
 0x6a9   :  { %671 = vadd.xlane.f32.xlu0 %v670_v39  ;;  %vm730_vm8 = vmor %vm728_vm7, %vm729_vm6 }
 0x6aa   :  { %v721_v41 = vsel %vm720_vm5, %v2297_v17, %v717_v33  ;;  %v724_v34 = vmul.f32 %v2299_v29, %v723_v10 }
 0x6ab   :  { %v752_v1 = vmul.f32 %v721_v41, %v684_v49 }
 0x6ac   :  { %v725_v2 = vmul.f32 0.5, %v724_v34  ;;  %v2957_v34 = vld [vmem:[%s3431_s13 + $0x8] sm:$0xff] }
 0x6ad   :  { %v759_v4 = vmul.f32 %v2866_v36, %v752_v1 }
 0x6ae   :  { %v726_v5 = vsub.f32 1.5, %v725_v2 }
 0x6af   :  { %v2875_v43 = vadd.f32 %v2871_v11, %v759_v4 }
 0x6b0   :  { %v727_v63 = vmul.f32 %v2299_v29, %v726_v5  ;;  %v2963_v5 = vld [vmem:[%s3431_s13] sm:$0xff] }
 0x6b1   :  { %2147 = vmatmul.msk.f32.vlgmr.msrb.gmra.mxu2 %vm140_vm0, %v2875_v43 }
 0x6b2   :  { %v731_v35 = vsel %vm730_vm8, %v2299_v29, %v727_v63  ;;  %v2951_v29 = vld [vmem:[%s3431_s13 + $0x10] sm:$0xff] }
 0x6b3   :  { %v753_v37 = vmul.f32 %v731_v35, %v685_v30  ;;  %1019 = vmatpush.msra.mxu0 %v2951_v29 }
 0x6b5   :  { %v760_v38 = vmul.f32 %v2866_v36, %v753_v37  ;;  %1020 = vmatpush.msra.mxu0 %v2957_v34 }
 0x6b7   :  { %v2881_v0 = vadd.f32 %v2871_v11, %v760_v38  ;;  %1021 = vmatpush.msra.mxu0 %v2963_v5 }
 0x6b9   :  { %2148 = vmatmul.msk.f32.gmra.mxu2 %vm140_vm0, %v2881_v0 }
 0x714   :  { %v669_v3 = vpop.xlane.xlu1 %668 }
 0x715   :  { %v682_v40 = vmul.f32 %v2835_v6, %v669_v3 }
 0x717   :  { %v2886_v42 = vsub.f32 %v659_v16, %v682_v40 }
 0x719   :  { %v690_v44 = vmul.f32 %v2886_v42, %v2886_v42 }
 0x71b   :  { %v698_v14 = vsel %vm140_vm0, %v690_v44, 0.0 }
 0x71c   :  { %699 = vadd.xlane.f32.xlu1 %v698_v14  ;;  %v672_v45 = vpop.xlane.xlu0 %671 }
 0x71d   :  { %v683_v46 = vmul.f32 %v2835_v6, %v672_v45 }
 0x71f   :  { %v2892_v47 = vsub.f32 %v660_v28, %v683_v46 }
 0x721   :  { %v691_v48 = vmul.f32 %v2892_v47, %v2892_v47 }
 0x723   :  { %v701_v49 = vsel %vm140_vm0, %v691_v48, 0.0 }
 0x724   :  { %702 = vadd.xlane.f32.xlu2 %v701_v49 }
 0x734   :  { %v802_v8 = vpop.f32.mrf.mxu2 }
 0x735   :  { %v2903_v51 = vadd.f32 %v2900_v50, %v802_v8 }
 0x737   :  { %v2906_v52 = vmul.f32 0.70710677, %v2903_v51 }
 0x739   :  { %v822_v26 = vmul.f32 %v2906_v52, %v2906_v52 }
 0x73b   :  { %v823_v30 = vmin.f32 %v822_v26, 16.0 }
 0x73c   :  { %v805_v31 = vpop.f32.mrf.mxu2 }
 0x73d   :  { %v824_v56 = vmul.f32 2.1237322e-06, %v823_v30  ;;  %v835_v62 = vmul.f32 3.8918573e-05, %v823_v30  ;;  %v2916_v7 = vadd.f32 %v2900_v50, %v805_v31 }
 0x73f   :  { %v825_v13 = vadd.f32 0.00028619796, %v824_v56  ;;  %v836_v53 = vadd.f32 0.001143296, %v835_v62  ;;  %v2926_v55 = vmul.f32 0.70710677, %v2916_v7 }
 0x741   :  { %v826_v16 = vmul.f32 %v825_v13, %v823_v30  ;;  %v837_v17 = vmul.f32 %v836_v53, %v823_v30  ;;  %v862_v19 = vmul.f32 %v2926_v55, %v2926_v55 }
 0x743   :  { %v838_v21 = vadd.f32 0.014752088, %v837_v17  ;;  %v827_v22 = vadd.f32 0.0036580483, %v826_v16  ;;  %v863_v23 = vmin.f32 %v862_v19, 16.0 }
 0x745   :  { %v839_v25 = vmul.f32 %v838_v21, %v823_v30  ;;  %v864_v27 = vmul.f32 2.1237322e-06, %v863_v23  ;;  %v875_v28 = vmul.f32 3.8918573e-05, %v863_v23  ;;  %v828_v10 = vmul.f32 %v827_v22, %v823_v30 }
 0x747   :  { %v840_v33 = vadd.f32 0.112945676, %v839_v25  ;;  %v865_v39 = vadd.f32 0.00028619796, %v864_v27  ;;  %v876_v41 = vadd.f32 0.001143296, %v875_v28 }
 0x748   :  { %v829_v35 = vadd.f32 0.05243302, %v828_v10 }
 0x749   :  { %v841_v1 = vmul.f32 %v840_v33, %v823_v30  ;;  %v866_v2 = vmul.f32 %v865_v39, %v863_v23  ;;  %v877_v4 = vmul.f32 %v876_v41, %v863_v23 }
 0x74a   :  { %v830_v14 = vmul.f32 %v829_v35, %v823_v30 }
 0x74b   :  { %v842_v63 = vadd.f32 0.4994258, %v841_v1  ;;  %v878_v37 = vadd.f32 0.014752088, %v877_v4  ;;  %v867_v3 = vadd.f32 0.0036580483, %v866_v2 }
 0x74c   :  { %v831_v49 = vadd.f32 0.18741608, %v830_v14 }
 0x74d   :  { %v843_v38 = vmul.f32 %v842_v63, %v823_v30  ;;  %v879_v40 = vmul.f32 %v878_v37, %v863_v23  ;;  %v868_v46 = vmul.f32 %v867_v3, %v863_v23 }
 0x74e   :  { %v832_v62 = vmul.f32 %v831_v49, %v823_v30 }
 0x74f   :  { %v844_v44 = vadd.f32 1.0, %v843_v38  ;;  %v880_v45 = vadd.f32 0.112945676, %v879_v40  ;;  %v869_v26 = vadd.f32 0.05243302, %v868_v46 }
 0x750   :  { %v833_v21 = vadd.f32 1.1283791, %v832_v62 }
 0x751   :  { %2300 = vrcp.f32 %v844_v44  ;;  %v881_v48 = vmul.f32 %v880_v45, %v863_v23  ;;  %v870_v16 = vmul.f32 %v869_v26, %v863_v23  ;;  %v856_v19 = vand.u32 2147483648, %v844_v44 }
 0x752   :  { %v854_v25 = vand.u32 2147483647, %v844_v44  ;;  %vm850_vm10 = vweird.f32 %v844_v44  ;;  %v834_v39 = vmul.f32 %v833_v21, %v2906_v52 }
 0x753   :  { %v882_v8 = vadd.f32 0.4994258, %v881_v48  ;;  %v871_v27 = vadd.f32 0.18741608, %v870_v16  ;;  %v857_v33 = vor.u32 1.1754944e-38, %v856_v19 }
 0x754   :  { %vm855_vm12 = vcmp.eq.f32.partialorder %v854_v25, 8.507059e+37 }
 0x755   :  { %v883_v31 = vmul.f32 %v882_v8, %v863_v23  ;;  %v872_v1 = vmul.f32 %v871_v27, %v863_v23 }
 0x757   :  { %v2301_v56 = vpop.eup %2300  ;;  %v884_v53 = vadd.f32 1.0, %v883_v31  ;;  %v873_v38 = vadd.f32 1.1283791, %v872_v1  ;;  %v815_v31 = vmul.f32 0.5, %v2916_v7 }
 0x758   :  { %v846_v13 = vmul.f32 %v2301_v56, %v844_v44  ;;  %vm851_vm9 = vweird.f32 %v2301_v56  ;;  %v814_v44 = vmul.f32 0.5, %v2903_v51 }
 0x759   :  { %2302 = vrcp.f32 %v884_v53  ;;  %vm852_vm11 = vmor %vm850_vm10, %vm851_vm9  ;;  %v896_v37 = vand.u32 2147483648, %v884_v53  ;;  %v894_v40 = vand.u32 2147483647, %v884_v53  ;;  %vm890_vm14 = vweird.f32 %v884_v53 }
 0x75a   :  { %v847_v17 = vsub.f32 1.0, %v846_v13  ;;  %v874_v23 = vmul.f32 %v873_v38, %v2926_v55 }
 0x75b   :  { %v897_v46 = vor.u32 1.1754944e-38, %v896_v37  ;;  %vm895_vm3 = vcmp.eq.f32.partialorder %v894_v40, 8.507059e+37 }
 0x75c   :  { %v848_v22 = vmul.f32 %v2301_v56, %v847_v17 }
 0x75e   :  { %v849_v28 = vadd.f32 %v2301_v56, %v848_v22 }
 0x75f   :  { %v2303_v10 = vpop.eup %2302 }
 0x760   :  { %v853_v41 = vsel %vm852_vm11, %v2301_v56, %v849_v28  ;;  %v886_v2 = vmul.f32 %v2303_v10, %v884_v53  ;;  %vm891_vm13 = vweird.f32 %v2303_v10 }
 0x761   :  { %v858_v30 = vsel %vm855_vm12, %v857_v33, %v853_v41  ;;  %vm892_vm2 = vmor %vm890_vm14, %vm891_vm13 }
 0x762   :  { %v859_v4 = vmul.f32 %v858_v30, %v834_v39  ;;  %v887_v63 = vsub.f32 1.0, %v886_v2 }
 0x764   :  { %v2151_v35 = vclamps-f32 %v859_v4, 1.0  ;;  %v888_v3 = vmul.f32 %v2303_v10, %v887_v63 }
 0x766   :  { %v982_v14 = vadd.f32 1.0, %v2151_v35  ;;  %v889_v45 = vadd.f32 %v2303_v10, %v888_v3  ;;  %v2991_v3 = vld [vmem:[%s3432_s14] ss:$0 sm:$0xff] }
 0x768   :  { %v986_v52 = vmul.f32 %v982_v14, %v814_v44  ;;  %v893_v48 = vsel %vm892_vm2, %v2303_v10, %v889_v45 }
 0x769   :  { %v898_v49 = vsel %vm895_vm3, %v897_v46, %v893_v48 }
 0x76a   :  { %2155 = vmatmul.msk.f32.vlgmr.msra.gmra.mxu0 %vm993_vm15, %v986_v52  ;;  %v899_v8 = vmul.f32 %v898_v49, %v874_v23 }
 0x76c   :  { %v2152_v26 = vclamps-f32 %v899_v8, 1.0 }
 0x76e   :  { %v983_v56 = vadd.f32 1.0, %v2152_v26 }
 0x770   :  { %v987_v51 = vmul.f32 %v983_v56, %v815_v31 }
 0x772   :  { %2156 = vmatmul.msk.f32.gmra.mxu0 %vm993_vm15, %v987_v51 }
 0x78f   :  { %v700_v62 = vpop.xlane.xlu1 %699 }
 0x790   :  { %v706_v13 = vmul.f32 %v700_v62, %v2835_v6 }
 0x792   :  { %v710_v53 = vadd.f32 1e-05, %v706_v13 }
 0x794   :  { %2304 = vrsqrt.f32 %v710_v53  ;;  %vm738_vm5 = vweird.f32 %v710_v53 }
 0x797   :  { %v703_v16 = vpop.xlane.xlu2 %702 }
 0x798   :  { %v707_v55 = vmul.f32 %v703_v16, %v2835_v6 }
 0x79a   :  { %v2305_v17 = vpop.eup %2304  ;;  %v711_v19 = vadd.f32 1e-05, %v707_v55 }
 0x79b   :  { %v733_v21 = vmul.f32 %v2305_v17, %v710_v53  ;;  %vm739_vm4 = vweird.f32 %v2305_v17 }
 0x79c   :  { %2306 = vrsqrt.f32 %v711_v19  ;;  %vm740_vm6 = vmor %vm738_vm5, %vm739_vm4  ;;  %vm748_vm8 = vweird.f32 %v711_v19 }
 0x79d   :  { %v734_v22 = vmul.f32 %v2305_v17, %v733_v21 }
 0x79f   :  { %v735_v25 = vmul.f32 0.5, %v734_v22 }
 0x7a1   :  { %v736_v27 = vsub.f32 1.5, %v735_v25 }
 0x7a2   :  { %v2307_v7 = vpop.eup %2306 }
 0x7a3   :  { %v737_v28 = vmul.f32 %v2305_v17, %v736_v27  ;;  %v743_v33 = vmul.f32 %v2307_v7, %v711_v19  ;;  %vm749_vm7 = vweird.f32 %v2307_v7 }
 0x7a4   :  { %vm750_vm9 = vmor %vm748_vm8, %vm749_vm7 }
 0x7a5   :  { %v741_v10 = vsel %vm740_vm6, %v2305_v17, %v737_v28  ;;  %v744_v39 = vmul.f32 %v2307_v7, %v743_v33 }
 0x7a6   :  { %v754_v41 = vmul.f32 %v741_v10, %v2886_v42 }
 0x7a7   :  { %v745_v30 = vmul.f32 0.5, %v744_v39 }
 0x7a8   :  { %v761_v1 = vmul.f32 %v2866_v36, %v754_v41 }
 0x7a9   :  { %v746_v2 = vsub.f32 1.5, %v745_v30 }
 0x7aa   :  { %v2977_v4 = vadd.f32 %v2871_v11, %v761_v1 }
 0x7ab   :  { %v747_v63 = vmul.f32 %v2307_v7, %v746_v2 }
 0x7ac   :  { %2149 = vmatmul.msk.f32.gmra.mxu2 %vm140_vm0, %v2977_v4 }
 0x7ad   :  { %v751_v35 = vsel %vm750_vm9, %v2307_v7, %v747_v63 }
 0x7ae   :  { %v755_v37 = vmul.f32 %v751_v35, %v2892_v47 }
 0x7b0   :  { %v762_v38 = vmul.f32 %v2866_v36, %v755_v37 }
 0x7b2   :  { %v2984_v42 = vadd.f32 %v2871_v11, %v762_v38 }
 0x7b4   :  { %2150 = vmatmul.msk.f32.gmra.mxu2 %vm140_vm0, %v2984_v42 }
 0x7e7   :  { %v1023_v40 = vpop.f32.mrf.mxu0 }
 0x7e8   :  { %v1024_v44 = vadd.f32 %v2991_v3, %v1023_v40 }
 0x7ea   :  { %v2995_v14 = vadd.f32 %v1024_v44, %v2875_v43 }
 0x7ec   :  { %v1039_v36 = vsel %vm140_vm0, %v2995_v14, 0.0 }
 0x7ed   :  { %1040 = vadd.xlane.f32.xlu0 %v1039_v36 }
 0x7ef   :  { %v1026_v11 = vpop.f32.mrf.mxu0 }
 0x7f0   :  { %v1027_v47 = vadd.f32 %v2991_v3, %v1026_v11 }
 0x7f2   :  { %v3001_v45 = vadd.f32 %v1027_v47, %v2881_v0 }
 0x7f4   :  { %v1042_v52 = vsel %vm140_vm0, %v3001_v45, 0.0 }
 0x7f5   :  { %1043 = vadd.xlane.f32.xlu1 %v1042_v52 }
 0x82f   :  { %v808_v46 = vpop.f32.mrf.mxu2 }
 0x830   :  { %v3006_v23 = vadd.f32 %v2900_v50, %v808_v46 }
 0x832   :  { %v820_v43 = vmul.f32 0.70710677, %v3006_v23 }
 0x834   :  { %v902_v48 = vmul.f32 %v820_v43, %v820_v43 }
 0x836   :  { %v903_v49 = vmin.f32 %v902_v48, 16.0 }
 0x837   :  { %v811_v8 = vpop.f32.mrf.mxu2 }
 0x838   :  { %v904_v26 = vmul.f32 2.1237322e-06, %v903_v49  ;;  %v915_v31 = vmul.f32 3.8918573e-05, %v903_v49  ;;  %v3010_v56 = vadd.f32 %v2900_v50, %v811_v8 }
 0x83a   :  { %v905_v0 = vadd.f32 0.00028619796, %v904_v26  ;;  %v916_v51 = vadd.f32 0.001143296, %v915_v31  ;;  %v3013_v62 = vmul.f32 0.70710677, %v3010_v56 }
 0x83c   :  { %v906_v13 = vmul.f32 %v905_v0, %v903_v49  ;;  %v917_v53 = vmul.f32 %v916_v51, %v903_v49  ;;  %v942_v16 = vmul.f32 %v3013_v62, %v3013_v62 }
 0x83e   :  { %v918_v55 = vadd.f32 0.014752088, %v917_v53  ;;  %v907_v17 = vadd.f32 0.0036580483, %v906_v13  ;;  %v943_v19 = vmin.f32 %v942_v16, 16.0 }
 0x840   :  { %v919_v21 = vmul.f32 %v918_v55, %v903_v49  ;;  %v944_v22 = vmul.f32 2.1237322e-06, %v943_v19  ;;  %v955_v25 = vmul.f32 3.8918573e-05, %v943_v19  ;;  %v908_v7 = vmul.f32 %v907_v17, %v903_v49 }
 0x842   :  { %v920_v27 = vadd.f32 0.112945676, %v919_v21  ;;  %v945_v50 = vadd.f32 0.00028619796, %v944_v22  ;;  %v956_v28 = vadd.f32 0.001143296, %v955_v25 }
 0x843   :  { %v909_v30 = vadd.f32 0.05243302, %v908_v7 }
 0x844   :  { %v921_v33 = vmul.f32 %v920_v27, %v903_v49  ;;  %v946_v10 = vmul.f32 %v945_v50, %v943_v19  ;;  %v957_v39 = vmul.f32 %v956_v28, %v943_v19 }
 0x845   :  { %v910_v38 = vmul.f32 %v909_v30, %v903_v49 }
 0x846   :  { %v922_v41 = vadd.f32 0.4994258, %v921_v33  ;;  %v958_v1 = vadd.f32 0.014752088, %v957_v39  ;;  %v947_v63 = vadd.f32 0.0036580483, %v946_v10 }
 0x847   :  { %v911_v11 = vadd.f32 0.18741608, %v910_v38 }
 0x848   :  { %v923_v2 = vmul.f32 %v922_v41, %v903_v49  ;;  %v959_v35 = vmul.f32 %v958_v1, %v943_v19  ;;  %v948_v44 = vmul.f32 %v947_v63, %v943_v19 }
 0x849   :  { %v912_v8 = vmul.f32 %v911_v11, %v903_v49 }
 0x84a   :  { %v924_v37 = vadd.f32 1.0, %v923_v2  ;;  %v960_v40 = vadd.f32 0.112945676, %v959_v35  ;;  %v949_v52 = vadd.f32 0.05243302, %v948_v44  ;;  %v816_v35 = vmul.f32 0.5, %v3006_v23 }
 0x84b   :  { %v913_v53 = vadd.f32 1.1283791, %v912_v8 }
 0x84c   :  { %2308 = vrcp.f32 %v924_v37  ;;  %v961_v36 = vmul.f32 %v960_v40, %v943_v19  ;;  %v950_v0 = vmul.f32 %v949_v52, %v943_v19  ;;  %v936_v13 = vand.u32 2147483648, %v924_v37 }
 0x84d   :  { %v934_v55 = vand.u32 2147483647, %v924_v37  ;;  %vm930_vm11 = vweird.f32 %v924_v37  ;;  %v914_v27 = vmul.f32 %v913_v53, %v820_v43 }
 0x84e   :  { %v962_v47 = vadd.f32 0.4994258, %v961_v36  ;;  %v951_v17 = vadd.f32 0.18741608, %v950_v0  ;;  %v937_v22 = vor.u32 1.1754944e-38, %v936_v13 }
 0x84f   :  { %vm935_vm13 = vcmp.eq.f32.partialorder %v934_v55, 8.507059e+37 }
 0x850   :  { %v963_v46 = vmul.f32 %v962_v47, %v943_v19  ;;  %v952_v50 = vmul.f32 %v951_v17, %v943_v19 }
 0x852   :  { %v2309_v48 = vpop.eup %2308  ;;  %v964_v31 = vadd.f32 1.0, %v963_v46  ;;  %v953_v30 = vadd.f32 1.1283791, %v952_v50 }
 0x853   :  { %v926_v26 = vmul.f32 %v2309_v48, %v924_v37  ;;  %vm931_vm10 = vweird.f32 %v2309_v48 }
 0x854   :  { %2310 = vrcp.f32 %v964_v31  ;;  %vm932_vm12 = vmor %vm930_vm11, %vm931_vm10  ;;  %v976_v39 = vand.u32 2147483648, %v964_v31  ;;  %v974_v2 = vand.u32 2147483647, %v964_v31  ;;  %vm970_vm2 = vweird.f32 %v964_v31 }
 0x855   :  { %v927_v51 = vsub.f32 1.0, %v926_v26  ;;  %v954_v36 = vmul.f32 %v953_v30, %v3013_v62  ;;  %v817_v26 = vmul.f32 0.5, %v3010_v56 }
 0x856   :  { %v977_v40 = vor.u32 1.1754944e-38, %v976_v39  ;;  %vm975_vm4 = vcmp.eq.f32.partialorder %v974_v2, 8.507059e+37 }
 0x857   :  { %v928_v16 = vmul.f32 %v2309_v48, %v927_v51 }
 0x859   :  { %v929_v21 = vadd.f32 %v2309_v48, %v928_v16 }
 0x85a   :  { %v2311_v25 = vpop.eup %2310 }
 0x85b   :  { %v933_v7 = vsel %vm932_vm12, %v2309_v48, %v929_v21  ;;  %v966_v28 = vmul.f32 %v2311_v25, %v964_v31  ;;  %vm971_vm14 = vweird.f32 %v2311_v25 }
 0x85c   :  { %v938_v49 = vsel %vm935_vm13, %v937_v22, %v933_v7  ;;  %vm972_vm3 = vmor %vm970_vm2, %vm971_vm14 }
 0x85d   :  { %v939_v33 = vmul.f32 %v938_v49, %v914_v27  ;;  %v967_v10 = vsub.f32 1.0, %v966_v28 }
 0x85f   :  { %v2153_v41 = vclamps-f32 %v939_v33, 1.0  ;;  %v968_v1 = vmul.f32 %v2311_v25, %v967_v10 }
 0x860   :  { %v1041_v63 = vpop.xlane.xlu0 %1040 }
 0x861   :  { %v1051_v37 = vmul.f32 %v1041_v63, %v2835_v6  ;;  %v984_v38 = vadd.f32 1.0, %v2153_v41  ;;  %v969_v43 = vadd.f32 %v2311_v25, %v968_v1 }
 0x863   :  { %v1055_v19 = vsub.f32 %v2995_v14, %v1051_v37  ;;  %v988_v44 = vmul.f32 %v984_v38, %v816_v35  ;;  %v973_v11 = vsel %vm972_vm3, %v2311_v25, %v969_v43 }
 0x864   :  { %v978_v47 = vsel %vm975_vm4, %v977_v40, %v973_v11 }
 0x865   :  { %2157 = vmatmul.msk.f32.gmra.mxu0 %vm993_vm15, %v988_v44  ;;  %v1059_v52 = vmul.f32 %v1055_v19, %v1055_v19  ;;  %v979_v46 = vmul.f32 %v978_v47, %v954_v36 }
 0x867   :  { %v1063_v23 = vsel %vm140_vm0, %v1059_v52, 0.0  ;;  %v2154_v48 = vclamps-f32 %v979_v46, 1.0 }
 0x868   :  { %1064 = vadd.xlane.f32.xlu2 %v1063_v23  ;;  %v1044_v8 = vpop.xlane.xlu1 %1043 }
 0x869   :  { %v1052_v31 = vmul.f32 %v1044_v8, %v2835_v6  ;;  %v985_v14 = vadd.f32 1.0, %v2154_v48 }
 0x86b   :  { %v1056_v0 = vsub.f32 %v3001_v45, %v1052_v31  ;;  %v989_v62 = vmul.f32 %v985_v14, %v817_v26 }
 0x86d   :  { %2158 = vmatmul.msk.f32.gmra.mxu0 %vm993_vm15, %v989_v62  ;;  %v1060_v51 = vmul.f32 %v1056_v0, %v1056_v0 }
 0x86f   :  { %v1066_v13 = vsel %vm140_vm0, %v1060_v51, 0.0 }
 0x870   :  { %1067 = vadd.xlane.f32.xlu0 %v1066_v13 }
 0x8db   :  { %v1065_v53 = vpop.xlane.xlu2 %1064 }
 0x8dc   :  { %v1075_v16 = vmul.f32 %v1065_v53, %v2835_v6  ;;  %v2360_v53 = vld [vmem:[%s3421_s3] ss:$0 sm:$0xff] }
 0x8de   :  { %v1079_v55 = vadd.f32 1e-05, %v1075_v16 }
 0x8e0   :  { %2312 = vrsqrt.f32 %v1079_v55  ;;  %vm1089_vm6 = vweird.f32 %v1079_v55 }
 0x8e2   :  { %v1029_v17 = vpop.f32.mrf.mxu0 }
 0x8e3   :  { %v1030_v56 = vadd.f32 %v2991_v3, %v1029_v17  ;;  %v1068_v21 = vpop.xlane.xlu0 %1067 }
 0x8e4   :  { %v1076_v22 = vmul.f32 %v1068_v21, %v2835_v6 }
 0x8e5   :  { %v1037_v45 = vadd.f32 %v1030_v56, %v2977_v4  ;;  %v3038_v4 = vld [vmem:[%s3433_s15] ss:$0 sm:$0xff] }
 0x8e6   :  { %v2313_v25 = vpop.eup %2312  ;;  %v1080_v7 = vadd.f32 1e-05, %v1076_v22 }
 0x8e7   :  { %v1084_v27 = vmul.f32 %v2313_v25, %v1079_v55  ;;  %v1045_v49 = vsel %vm140_vm0, %v1037_v45, 0.0  ;;  %vm1090_vm5 = vweird.f32 %v2313_v25 }
 0x8e8   :  { %1046 = vadd.xlane.f32.xlu2 %v1045_v49  ;;  %2314 = vrsqrt.f32 %v1080_v7  ;;  %vm1091_vm7 = vmor %vm1089_vm6, %vm1090_vm5  ;;  %vm1099_vm9 = vweird.f32 %v1080_v7 }
 0x8e9   :  { %v1085_v50 = vmul.f32 %v2313_v25, %v1084_v27 }
 0x8ea   :  { %v1032_v33 = vpop.f32.mrf.mxu0 }
 0x8eb   :  { %v1086_v28 = vmul.f32 0.5, %v1085_v50  ;;  %v1033_v10 = vadd.f32 %v2991_v3, %v1032_v33 }
 0x8ed   :  { %v1087_v39 = vsub.f32 1.5, %v1086_v28  ;;  %v1038_v41 = vadd.f32 %v1033_v10, %v2984_v42  ;;  %v3044_v42 = vld [vmem:[%s3434_s16] ss:$0 sm:$0xff] }
 0x8ee   :  { %v2315_v30 = vpop.eup %2314 }
 0x8ef   :  { %v1088_v1 = vmul.f32 %v2313_v25, %v1087_v39  ;;  %v1094_v2 = vmul.f32 %v2315_v30, %v1080_v7  ;;  %v1048_v63 = vsel %vm140_vm0, %v1038_v41, 0.0  ;;  %vm1100_vm8 = vweird.f32 %v2315_v30 }
 0x8f0   :  { %1049 = vadd.xlane.f32.xlu0 %v1048_v63  ;;  %vm1101_vm10 = vmor %vm1099_vm9, %vm1100_vm8 }
 0x8f1   :  { %v1092_v35 = vsel %vm1091_vm7, %v2313_v25, %v1088_v1  ;;  %v1095_v3 = vmul.f32 %v2315_v30, %v1094_v2 }
 0x8f2   :  { %v1123_v37 = vmul.f32 %v1092_v35, %v1055_v19 }
 0x8f3   :  { %v1096_v43 = vmul.f32 0.5, %v1095_v3 }
 0x8f4   :  { %v1130_v38 = vmul.f32 %v3038_v4, %v1123_v37 }
 0x8f5   :  { %v1097_v40 = vsub.f32 1.5, %v1096_v43 }
 0x8f6   :  { %v3048_v44 = vadd.f32 %v3044_v42, %v1130_v38 }
 0x8f7   :  { %v1098_v36 = vmul.f32 %v2315_v30, %v1097_v40 }
 0x8f8   :  { %2159 = vmatmul.msk.f32.vlgmr.msra.gmra.mxu3 %vm140_vm0, %v3048_v44 }
 0x8f9   :  { %v1102_v19 = vsel %vm1101_vm10, %v2315_v30, %v1098_v36 }
 0x8fa   :  { %v1124_v11 = vmul.f32 %v1102_v19, %v1056_v0 }
 0x8fc   :  { %v1131_v47 = vmul.f32 %v3038_v4, %v1124_v11 }
 0x8fe   :  { %v3054_v52 = vadd.f32 %v3044_v42, %v1131_v47 }
 0x900   :  { %2160 = vmatmul.msk.f32.gmra.mxu3 %vm140_vm0, %v3054_v52 }
 0x95b   :  { %v1047_v46 = vpop.xlane.xlu2 %1046 }
 0x95c   :  { %v1053_v23 = vmul.f32 %v1047_v46, %v2835_v6 }
 0x95e   :  { %v1057_v48 = vsub.f32 %v1037_v45, %v1053_v23 }
 0x960   :  { %v1061_v8 = vmul.f32 %v1057_v48, %v1057_v48 }
 0x962   :  { %v1069_v26 = vsel %vm140_vm0, %v1061_v8, 0.0  ;;  %v3115_v8 = vld [vmem:[%s3422_s4 + $0x18] sm:$0xff] }
 0x963   :  { %1070 = vadd.xlane.f32.xlu2 %v1069_v26  ;;  %v1050_v31 = vpop.xlane.xlu0 %1049 }
 0x964   :  { %v1054_v14 = vmul.f32 %v1050_v31, %v2835_v6 }
 0x966   :  { %v1058_v0 = vsub.f32 %v1038_v41, %v1054_v14 }
 0x968   :  { %v1062_v62 = vmul.f32 %v1058_v0, %v1058_v0 }
 0x96a   :  { %v1072_v51 = vsel %vm140_vm0, %v1062_v62, 0.0 }
 0x96b   :  { %1073 = vadd.xlane.f32.xlu0 %v1072_v51 }
 0x97b   :  { %v1170_v13 = vpop.f32.mrf.mxu3 }
 0x97c   :  { %v3065_v16 = vadd.f32 %v2360_v53, %v1170_v13 }
 0x97e   :  { %v1182_v56 = vmul.f32 %v3065_v16, %v2643_v18 }
 0x983   :  { %v1173_v55 = vpop.f32.mrf.mxu3 }
 0x984   :  { %v3067_v17 = vadd.f32 %v2360_v53, %v1173_v55 }
 0x986   :  { %v1183_v21 = vmul.f32 %v3067_v17, %v2634_v12 }
 0x988   :  { %v3073_v22 = vpack.i.bf16 %v1182_v56, %v1183_v21 }
 0x98a   :  { %2251 = vrot.lane.b32.xlu1 %v3073_v22, %s2467_s0 }
 0x9d6   :  { %v1071_v45 = vpop.xlane.xlu2 %1070 }
 0x9d7   :  { %v1077_v25 = vmul.f32 %v1071_v45, %v2835_v6 }
 0x9d9   :  { %v1081_v27 = vadd.f32 1e-05, %v1077_v25  ;;  %v3131_v25 = vld [vmem:[%s3423_s5 + $0x18] sm:$0xff] }
 0x9db   :  { %2316 = vrsqrt.f32 %v1081_v27  ;;  %vm1109_vm12 = vweird.f32 %v1081_v27 }
 0x9de   :  { %v1074_v7 = vpop.xlane.xlu0 %1073 }
 0x9df   :  { %v1078_v49 = vmul.f32 %v1074_v7, %v2835_v6 }
 0x9e1   :  { %v2317_v50 = vpop.eup %2316  ;;  %v1082_v33 = vadd.f32 1e-05, %v1078_v49  ;;  %v3152_v49 = vld [vmem:[%s3423_s5] sm:$0xff] }
 0x9e2   :  { %v1104_v28 = vmul.f32 %v2317_v50, %v1081_v27  ;;  %vm1110_vm11 = vweird.f32 %v2317_v50  ;;  %v3145_v27 = vld [vmem:[%s3423_s5 + $0x8] sm:$0xff] }
 0x9e3   :  { %2318 = vrsqrt.f32 %v1082_v33  ;;  %vm1111_vm13 = vmor %vm1109_vm12, %vm1110_vm11  ;;  %vm1119_vm2 = vweird.f32 %v1082_v33 }
 0x9e4   :  { %v1105_v18 = vmul.f32 %v2317_v50, %v1104_v28 }
 0x9e6   :  { %v1106_v10 = vmul.f32 0.5, %v1105_v18 }
 0x9e8   :  { %v1107_v12 = vsub.f32 1.5, %v1106_v10 }
 0x9e9   :  { %v2319_v39 = vpop.eup %2318 }
 0x9ea   :  { %v1108_v41 = vmul.f32 %v2317_v50, %v1107_v12  ;;  %v1114_v30 = vmul.f32 %v2319_v39, %v1082_v33  ;;  %vm1120_vm14 = vweird.f32 %v2319_v39 }
 0x9eb   :  { %vm1121_vm3 = vmor %vm1119_vm2, %vm1120_vm14 }
 0x9ec   :  { %v1112_v1 = vsel %vm1111_vm13, %v2317_v50, %v1108_v41  ;;  %v1115_v2 = vmul.f32 %v2319_v39, %v1114_v30 }
 0x9ed   :  { %v1125_v63 = vmul.f32 %v1112_v1, %v1057_v48  ;;  %v3094_v48 = vld [vmem:[%s3422_s4] sm:$0xff] }
 0x9ee   :  { %v1116_v35 = vmul.f32 0.5, %v1115_v2 }
 0x9ef   :  { %v1132_v37 = vmul.f32 %v3038_v4, %v1125_v63 }
 0x9f0   :  { %v1117_v3 = vsub.f32 1.5, %v1116_v35 }
 0x9f1   :  { %v3081_v38 = vadd.f32 %v3044_v42, %v1132_v37 }
 0x9f2   :  { %v1118_v43 = vmul.f32 %v2319_v39, %v1117_v3 }
 0x9f3   :  { %2161 = vmatmul.msk.f32.gmra.mxu3 %vm140_vm0, %v3081_v38 }
 0x9f4   :  { %v1122_v40 = vsel %vm1121_vm3, %v2319_v39, %v1118_v43 }
 0x9f5   :  { %v1126_v36 = vmul.f32 %v1122_v40, %v1058_v0 }
 0x9f7   :  { %v1133_v19 = vmul.f32 %v3038_v4, %v1126_v36  ;;  %v3101_v4 = vld [vmem:[%s3422_s4 + $0x8] sm:$0xff] }
 0x9f9   :  { %v3087_v11 = vadd.f32 %v3044_v42, %v1133_v19  ;;  %v3108_v42 = vld [vmem:[%s3422_s4 + $0x10] sm:$0xff] }
 0x9fb   :  { %2162 = vmatmul.msk.f32.gmra.mxu3 %vm140_vm0, %v3087_v11 }
 0x9fc   :  { %v2252_v47 = vpop.permute.xlu1 %2251 }
 0x9fd   :  { %v2253_v46 = vunpack.i.l.bf16 %v2252_v47  ;;  %v2254_v23 = vunpack.i.h.bf16 %v2252_v47 }
 0x9ff   :  { %1208 = vmatpush.msra.mxu1 %v2253_v46 }
 0xa01   :  { %1209 = vmatpush.msra.mxu1 %v2254_v23 }
 0xa02   :  { %2163 = vmatmul.msk.f32.vlgmr.msra.gmra.mxu1 %vm214_vm1, %v3094_v48 }
 0xa0a   :  { %2164 = vmatmul.msk.f32.gmra.mxu1 %vm214_vm1, %v3101_v4 }
 0xa12   :  { %2165 = vmatmul.msk.f32.gmra.mxu1 %vm214_vm1, %v3108_v42 }
 0xa1a   :  { %2166 = vmatmul.msk.f32.gmra.mxu1 %vm214_vm1, %v3115_v8 }
 0xa76   :  { %v1176_v26 = vpop.f32.mrf.mxu3 }
 0xa77   :  { %v3119_v31 = vadd.f32 %v2360_v53, %v1176_v26  ;;  %v2370_v26 = vld [vmem:[%s3424_s6 + $0x10] sm:$0xff] }
 0xa79   :  { %v1184_v51 = vmul.f32 %v3119_v31, %v2727_v54  ;;  %v3138_v54 = vld [vmem:[%s3423_s5 + $0x10] sm:$0xff] }
 0xa7e   :  { %v1179_v14 = vpop.f32.mrf.mxu3 }
 0xa7f   :  { %v3121_v0 = vadd.f32 %v2360_v53, %v1179_v14  ;;  %v1211_v62 = vpop.f32.mrf.mxu1 }
 0xa80   :  { %v1223_v50 = vmul.f32 %v3152_v49, %v1211_v62 }
 0xa81   :  { %v1185_v13 = vmul.f32 %v3121_v0, %v2734_v57 }
 0xa83   :  { %v2255_v55 = vpack.i.bf16 %v1184_v51, %v1185_v13  ;;  %v2371_v51 = vld [vmem:[%s3424_s6 + $0x8] sm:$0xff] }
 0xa85   :  { %2256 = vrot.lane.b32.xlu1 %v2255_v55, %s2467_s0 }
 0xa87   :  { %v1214_v56 = vpop.f32.mrf.mxu1 }
 0xa88   :  { %v1224_v7 = vmul.f32 %v3145_v27, %v1214_v56 }
 0xa8f   :  { %v1217_v21 = vpop.f32.mrf.mxu1 }
 0xa90   :  { %v1225_v57 = vmul.f32 %v3138_v54, %v1217_v21  ;;  %v2373_v21 = vld [vmem:[#allocation2 + $0x18] sm:$0xff] }
 0xa97   :  { %v1220_v45 = vpop.f32.mrf.mxu1 }
 0xa98   :  { %v1226_v53 = vmul.f32 %v3131_v25, %v1220_v45  ;;  %v2374_v45 = vld [vmem:[#allocation2 + $0x10] sm:$0xff] }
 0xa9a   :  { %2171 = vmatpush.xpose.msk.msrb.mxu0 %vm140_vm0, %v1226_v53 }
 0xa9e   :  { %2172 = vmatpush.xpose.msk.msrb.mxu0 %vm140_vm0, %v1225_v57  ;;  %v2375_v57 = vld [vmem:[#allocation2 + $0x8] sm:$0xff] }
 0xaa2   :  { %2173 = vmatpush.xpose.msk.msrb.mxu0 %vm140_vm0, %v1224_v7  ;;  %v2376_v7 = vld [vmem:[#allocation2] sm:$0xff] }
 0xaa6   :  { %2174 = vmatpush.xpose.msk.msrb.mxu0 %vm140_vm0, %v1223_v50 }
 0xaa9   :  { %2175 = vmatmul.msk.f32.vlgmr.msrb.gmra.mxu0 %vm140_vm0, %v3065_v16 }
 0xab1   :  { %2176 = vmatmul.msk.f32.gmra.mxu0 %vm140_vm0, %v3067_v17 }
 0xaf7   :  { %v2257_v28 = vpop.permute.xlu1 %2256 }
 0xaf8   :  { %v2258_v33 = vunpack.i.l.bf16 %v2257_v28  ;;  %v2259_v18 = vunpack.i.h.bf16 %v2257_v28 }
 0xafa   :  { %1405 = vmatpush.msra.mxu3 %v2258_v33 }
 0xafc   :  { %1406 = vmatpush.msra.mxu3 %v2259_v18 }
 0xb26   :  { %v1301_v10 = vpop.f32.mrf.mxu0 }
 0xb27   :  { %v1307_v12 = vmul.f32 0.35355338, %v1301_v10 }
 0xb29   :  { %v1309_v39 = vsel %vm140_vm0, %v1307_v12, -inf }
 0xb2a   :  { %1310 = vmax.xlane.f32.xlu2 %v1309_v39 }
 0xb2e   :  { %v1304_v41 = vpop.f32.mrf.mxu0 }
 0xb2f   :  { %v1308_v30 = vmul.f32 0.35355338, %v1304_v41 }
 0xb31   :  { %v1312_v1 = vsel %vm140_vm0, %v1308_v30, -inf }
 0xb32   :  { %1313 = vmax.xlane.f32.xlu0 %v1312_v1 }
 0xb42   :  { %2261 = vrot.lane.b32.xlu2 %v3073_v22, %s2468_s30 }
 0xb46   :  { %2266 = vrot.lane.b32.xlu0 %v2255_v55, %s2468_s30  ;;  %v2372_v55 = vld [vmem:[%s3424_s6] sm:$0xff] }
 0xb9d   :  { %v1311_v16 = vpop.xlane.xlu2 %1310 }
 0xb9e   :  { %v1315_v17 = vsub.f32 %v1307_v12, %v1311_v16 }
 0xba0   :  { %v1317_v2 = vmul.f32 1.442695, %v1315_v17 }
 0xba2   :  { %2320 = vpow2.f32 %v1317_v2 }
 0xba5   :  { %v2262_v63 = vpop.permute.xlu2 %2261  ;;  %v1314_v35 = vpop.xlane.xlu0 %1313 }
 0xba6   :  { %v2263_v37 = vunpack.i.l.bf16 %v2262_v63  ;;  %v1316_v3 = vsub.f32 %v1308_v30, %v1314_v35  ;;  %v2264_v40 = vunpack.i.h.bf16 %v2262_v63 }
 0xba8   :  { %v2321_v43 = vpop.eup %2320  ;;  %v1319_v36 = vmul.f32 1.442695, %v1316_v3  ;;  %1247 = vmatpush.msra.mxu2 %v2263_v37 }
 0xba9   :  { %2177 = vmatmul.msk.f32.vlgmr.msrb.gmra.mxu3 %vm140_vm0, %v2321_v43 }
 0xbaa   :  { %2322 = vpow2.f32 %v1319_v36  ;;  %1248 = vmatpush.msra.mxu2 %v2264_v40  ;;  %1745 = vmatpush.msrb.mxu3 %v2843_v58 }
 0xbab   :  { %2167 = vmatmul.msk.f32.vlgmr.msra.gmra.mxu2 %vm214_vm1, %v3094_v48 }
 0xbac   :  { %1746 = vmatpush.msrb.mxu3 %v2846_v59 }
 0xbae   :  { %1747 = vmatpush.msrb.mxu3 %v2849_v60 }
 0xbb0   :  { %v2323_v22 = vpop.eup %2322  ;;  %1748 = vmatpush.msrb.mxu3 %v2852_v61 }
 0xbb1   :  { %2178 = vmatmul.msk.f32.gmra.mxu3 %vm140_vm0, %v2323_v22 }
 0xbb3   :  { %2168 = vmatmul.msk.f32.gmra.mxu2 %vm214_vm1, %v3101_v4 }
 0xbb8   :  { %v2267_v19 = vpop.permute.xlu0 %2266 }
 0xbb9   :  { %v2268_v47 = vunpack.i.l.bf16 %v2267_v19  ;;  %2181 = vmatmul.msk.f32.vlgmr.msra.gmra.mxu3 %vm214_vm1, %v3094_v48  ;;  %v2269_v58 = vunpack.i.h.bf16 %v2267_v19 }
 0xbbb   :  { %2169 = vmatmul.msk.f32.gmra.mxu2 %vm214_vm1, %v3108_v42  ;;  %1444 = vmatpush.msrb.mxu1 %v2268_v47 }
 0xbbd   :  { %1445 = vmatpush.msrb.mxu1 %v2269_v58 }
 0xbbe   :  { %2185 = vmatmul.msk.f32.vlgmr.msrb.gmra.mxu1 %vm214_vm1, %v3094_v48 }
 0xbbf   :  { %1958 = vmatpush.msra.mxu1 %v2913_v32 }
 0xbc1   :  { %2182 = vmatmul.msk.f32.gmra.mxu3 %vm214_vm1, %v3101_v4  ;;  %1959 = vmatpush.msra.mxu1 %v2922_v9 }
 0xbc3   :  { %2170 = vmatmul.msk.f32.gmra.mxu2 %vm214_vm1, %v3115_v8  ;;  %1960 = vmatpush.msra.mxu1 %v2931_v15 }
 0xbc5   :  { %1961 = vmatpush.msra.mxu1 %v2939_v20 }
 0xbc6   :  { %2186 = vmatmul.msk.f32.gmra.mxu1 %vm214_vm1, %v3101_v4 }
 0xbc7   :  { %1962 = vmatpush.msra.mxu1 %v2945_v24 }
 0xbc9   :  { %2183 = vmatmul.msk.f32.gmra.mxu3 %vm214_vm1, %v3108_v42  ;;  %1963 = vmatpush.msra.mxu1 %v2951_v29 }
 0xbcb   :  { %1964 = vmatpush.msra.mxu1 %v2957_v34 }
 0xbcd   :  { %1965 = vmatpush.msra.mxu1 %v2963_v5 }
 0xbce   :  { %2187 = vmatmul.msk.f32.gmra.mxu1 %vm214_vm1, %v3108_v42  ;;  %v2369_v42 = vld [vmem:[%s3424_s6 + $0x18] sm:$0xff] }
 0xbd1   :  { %2184 = vmatmul.msk.f32.gmra.mxu3 %vm214_vm1, %v3115_v8 }
 0xbd6   :  { %2188 = vmatmul.msk.f32.gmra.mxu1 %vm214_vm1, %v3115_v8 }
 0xc2c   :  { %v1344_v59 = vpop.f32.mrf.mxu3 }
 0xc2d   :  { %2324 = vrcp.f32 %v1344_v59 }
 0xc2e   :  { %v1250_v60 = vpop.f32.mrf.mxu2 }
 0xc2f   :  { %v1262_v23 = vmul.f32 %v3152_v49, %v1250_v60 }
 0xc33   :  { %v2325_v46 = vpop.eup %2324 }
 0xc34   :  { %v1347_v61 = vpop.f32.mrf.mxu3  ;;  %v1352_v4 = vmul.f32 %v2325_v46, %v2321_v43 }
 0xc35   :  { %2326 = vrcp.f32 %v1347_v61 }
 0xc36   :  { %v1253_v32 = vpop.f32.mrf.mxu2 }
 0xc37   :  { %v1263_v5 = vmul.f32 %v3145_v27, %v1253_v32 }
 0xc3b   :  { %v2327_v8 = vpop.eup %2326  ;;  %v1447_v16 = vpop.f32.mrf.mxu1 }
 0xc3c   :  { %v1408_v9 = vpop.f32.mrf.mxu3  ;;  %v1353_v13 = vmul.f32 %v2327_v8, %v2323_v22  ;;  %v1459_v19 = vmul.f32 %v3152_v49, %v1447_v16 }
 0xc3d   :  { %v1420_v50 = vmul.f32 %v3152_v49, %v1408_v9  ;;  %v2377_v49 = vld [vmem:[%s3426_s8] ss:$0 sm:$0xff] }
 0xc3e   :  { %v1256_v15 = vpop.f32.mrf.mxu2 }
 0xc3f   :  { %v1264_v29 = vmul.f32 %v3138_v54, %v1256_v15 }
 0xc44   :  { %v1411_v20 = vpop.f32.mrf.mxu3 }
 0xc45   :  { %v1421_v53 = vmul.f32 %v3145_v27, %v1411_v20 }
 0xc46   :  { %v1259_v24 = vpop.f32.mrf.mxu2 }
 0xc47   :  { %v1265_v34 = vmul.f32 %v3131_v25, %v1259_v24 }
 0xc49   :  { %1372 = vmatpush.msra.mxu0 %v1265_v34 }
 0xc4b   :  { %1373 = vmatpush.msra.mxu0 %v1264_v29 }
 0xc4c   :  { %v1414_v48 = vpop.f32.mrf.mxu3 }
 0xc4d   :  { %1374 = vmatpush.msra.mxu0 %v1263_v5  ;;  %v1422_v56 = vmul.f32 %v3138_v54, %v1414_v48 }
 0xc4f   :  { %1375 = vmatpush.msra.mxu0 %v1262_v23 }
 0xc50   :  { %2179 = vmatmul.msk.f32.vlgmr.msra.gmra.mxu0 %vm140_vm0, %v1352_v4 }
 0xc51   :  { %1536 = vmatpush.msrb.mxu0 %v2369_v42 }
 0xc53   :  { %1537 = vmatpush.msrb.mxu0 %v2370_v26 }
 0xc54   :  { %v1417_v14 = vpop.f32.mrf.mxu3 }
 0xc55   :  { %v1423_v62 = vmul.f32 %v3131_v25, %v1417_v14  ;;  %1538 = vmatpush.msrb.mxu0 %v2371_v51 }
 0xc57   :  { %2189 = vmatpush.xpose.msk.msrb.mxu2 %vm140_vm0, %v1423_v62  ;;  %1539 = vmatpush.msrb.mxu0 %v2372_v55 }
 0xc58   :  { %2180 = vmatmul.msk.f32.gmra.mxu0 %vm140_vm0, %v1353_v13 }
 0xc59   :  { %1604 = vmatpush.msra.mxu0 %v2373_v21 }
 0xc5b   :  { %2190 = vmatpush.xpose.msk.msrb.mxu2 %vm140_vm0, %v1422_v56  ;;  %1605 = vmatpush.msra.mxu0 %v2374_v45 }
 0xc5d   :  { %1606 = vmatpush.msra.mxu0 %v2375_v57 }
 0xc5f   :  { %2191 = vmatpush.xpose.msk.msrb.mxu2 %vm140_vm0, %v1421_v53  ;;  %1607 = vmatpush.msra.mxu0 %v2376_v7 }
 0xc63   :  { %2192 = vmatpush.xpose.msk.msrb.mxu2 %vm140_vm0, %v1420_v50 }
 0xc66   :  { %2193 = vmatmul.msk.f32.vlgmr.msrb.gmra.mxu2 %vm140_vm0, %v3119_v31 }
 0xc6e   :  { %2194 = vmatmul.msk.f32.gmra.mxu2 %vm140_vm0, %v3121_v0  ;;  %v1450_v0 = vpop.f32.mrf.mxu1 }
 0xc6f   :  { %v1460_v22 = vmul.f32 %v3145_v27, %v1450_v0 }
 0xc76   :  { %v1453_v37 = vpop.f32.mrf.mxu1 }
 0xc77   :  { %v1461_v40 = vmul.f32 %v3138_v54, %v1453_v37 }
 0xc7e   :  { %v1456_v43 = vpop.f32.mrf.mxu1 }
 0xc7f   :  { %v1462_v36 = vmul.f32 %v3131_v25, %v1456_v43 }
 0xc81   :  { %1569 = vmatpush.msra.mxu2 %v1462_v36 }
 0xc83   :  { %1570 = vmatpush.msra.mxu2 %v1461_v40 }
 0xc85   :  { %1571 = vmatpush.msra.mxu2 %v1460_v22 }
 0xc87   :  { %1572 = vmatpush.msra.mxu2 %v1459_v19 }
 0xccd   :  { %v1377_v3 = vpop.f32.mrf.mxu0 }
 0xcd5   :  { %v1380_v47 = vpop.f32.mrf.mxu0 }
 0xce9   :  { %v1498_v28 = vpop.f32.mrf.mxu2 }
 0xcea   :  { %v1504_v33 = vmul.f32 0.35355338, %v1498_v28 }
 0xcec   :  { %v1506_v18 = vsel %vm140_vm0, %v1504_v33, -inf }
 0xced   :  { %1507 = vmax.xlane.f32.xlu1 %v1506_v18 }
 0xcf1   :  { %v1501_v10 = vpop.f32.mrf.mxu2 }
 0xcf2   :  { %v1505_v12 = vmul.f32 0.35355338, %v1501_v10 }
 0xcf4   :  { %v1509_v39 = vsel %vm140_vm0, %v1505_v12, -inf }
 0xcf5   :  { %1510 = vmax.xlane.f32.xlu0 %v1509_v39 }
 0xd60   :  { %v1508_v41 = vpop.xlane.xlu1 %1507 }
 0xd61   :  { %v1512_v30 = vsub.f32 %v1504_v33, %v1508_v41 }
 0xd63   :  { %v1514_v1 = vmul.f32 1.442695, %v1512_v30 }
 0xd65   :  { %2328 = vpow2.f32 %v1514_v1 }
 0xd68   :  { %v1511_v17 = vpop.xlane.xlu0 %1510 }
 0xd69   :  { %v1513_v31 = vsub.f32 %v1505_v12, %v1511_v17 }
 0xd6b   :  { %v2329_v2 = vpop.eup %2328  ;;  %v1516_v63 = vmul.f32 1.442695, %v1513_v31 }
 0xd6c   :  { %2195 = vmatmul.msk.f32.vlgmr.msrb.gmra.mxu0 %vm140_vm0, %v2329_v2 }
 0xd6d   :  { %2330 = vpow2.f32 %v1516_v63 }
 0xd73   :  { %v2331_v35 = vpop.eup %2330 }
 0xd74   :  { %2196 = vmatmul.msk.f32.gmra.mxu0 %vm140_vm0, %v2331_v35 }
 0xd7c   :  { %2199 = vmatmul.msk.f32.vlgmr.msra.gmra.mxu0 %vm140_vm0, %v1377_v3  ;;  %v3273_v3 = vld [vmem:[%s3428_s10] ss:$0 sm:$0xff] }
 0xd84   :  { %2200 = vmatmul.msk.f32.gmra.mxu0 %vm140_vm0, %v1380_v47 }
 0xde9   :  { %v1541_v58 = vpop.f32.mrf.mxu0 }
 0xdea   :  { %2332 = vrcp.f32 %v1541_v58 }
 0xdf0   :  { %v2333_v59 = vpop.eup %2332 }
 0xdf1   :  { %v1549_v60 = vmul.f32 %v2333_v59, %v2329_v2  ;;  %v1544_v61 = vpop.f32.mrf.mxu0 }
 0xdf2   :  { %2334 = vrcp.f32 %v1544_v61 }
 0xdf3   :  { %2197 = vmatmul.msk.f32.vlgmr.msra.gmra.mxu2 %vm140_vm0, %v1549_v60 }
 0xdf8   :  { %v2335_v25 = vpop.eup %2334 }
 0xdf9   :  { %v1609_v54 = vpop.f32.mrf.mxu0  ;;  %v1550_v27 = vmul.f32 %v2335_v25, %v2331_v35  ;;  %v3267_v35 = vld [vmem:[%s3427_s9] ss:$0 sm:$0xff] }
 0xdfa   :  { %v1610_v32 = vadd.f32 %v2377_v49, %v1609_v54 }
 0xdfb   :  { %2198 = vmatmul.msk.f32.gmra.mxu2 %vm140_vm0, %v1550_v27 }
 0xdfc   :  { %v1621_v9 = vadd.f32 %v1610_v32, %v3048_v44 }
 0xdfe   :  { %v1625_v15 = vsel %vm140_vm0, %v1621_v9, 0.0 }
 0xdff   :  { %1626 = vadd.xlane.f32.xlu2 %v1625_v15 }
 0xe01   :  { %v1612_v20 = vpop.f32.mrf.mxu0 }
 0xe02   :  { %v1613_v24 = vadd.f32 %v2377_v49, %v1612_v20  ;;  %v3301_v20 = vld [vmem:[%s3430_s12] ss:$0 sm:$0xff] }
 0xe04   :  { %v1622_v29 = vadd.f32 %v1613_v24, %v3054_v52 }
 0xe06   :  { %v1628_v34 = vsel %vm140_vm0, %v1622_v29, 0.0 }
 0xe07   :  { %1629 = vadd.xlane.f32.xlu1 %v1628_v34 }
 0xe72   :  { %v1627_v5 = vpop.xlane.xlu2 %1626 }
 0xe73   :  { %v1637_v46 = vmul.f32 %v1627_v5, %v2835_v6 }
 0xe75   :  { %v1641_v23 = vsub.f32 %v1621_v9, %v1637_v46 }
 0xe76   :  { %v1574_v48 = vpop.f32.mrf.mxu2 }
 0xe77   :  { %2201 = vmatmul.msk.f32.gmra.mxu0 %vm140_vm0, %v1574_v48  ;;  %v1645_v4 = vmul.f32 %v1641_v23, %v1641_v23 }
 0xe79   :  { %v1649_v44 = vsel %vm140_vm0, %v1645_v4, 0.0 }
 0xe7a   :  { %v1630_v42 = vpop.xlane.xlu1 %1629  ;;  %1650 = vadd.xlane.f32.xlu0 %v1649_v44 }
 0xe7b   :  { %v1638_v8 = vmul.f32 %v1630_v42, %v2835_v6 }
 0xe7d   :  { %v1642_v26 = vsub.f32 %v1622_v29, %v1638_v8 }
 0xe7e   :  { %v1577_v14 = vpop.f32.mrf.mxu2 }
 0xe7f   :  { %2202 = vmatmul.msk.f32.gmra.mxu0 %vm140_vm0, %v1577_v14  ;;  %v1646_v52 = vmul.f32 %v1642_v26, %v1642_v26 }
 0xe81   :  { %v1652_v62 = vsel %vm140_vm0, %v1646_v52, 0.0 }
 0xe82   :  { %1653 = vadd.xlane.f32.xlu2 %v1652_v62 }
 0xeed   :  { %v1651_v51 = vpop.xlane.xlu0 %1650 }
 0xeee   :  { %v1661_v13 = vmul.f32 %v1651_v51, %v2835_v6 }
 0xef0   :  { %v1665_v55 = vadd.f32 1e-05, %v1661_v13 }
 0xef2   :  { %2336 = vrsqrt.f32 %v1665_v55  ;;  %vm1675_vm4 = vweird.f32 %v1665_v55 }
 0xef4   :  { %v1615_v56 = vpop.f32.mrf.mxu0 }
 0xef5   :  { %v1616_v21 = vadd.f32 %v2377_v49, %v1615_v56  ;;  %v1654_v45 = vpop.xlane.xlu2 %1653 }
 0xef6   :  { %v1662_v53 = vmul.f32 %v1654_v45, %v2835_v6 }
 0xef7   :  { %v1623_v57 = vadd.f32 %v1616_v21, %v3081_v38 }
 0xef8   :  { %v2337_v7 = vpop.eup %2336  ;;  %v1666_v50 = vadd.f32 1e-05, %v1662_v53 }
 0xef9   :  { %v1670_v28 = vmul.f32 %v2337_v7, %v1665_v55  ;;  %v1631_v33 = vsel %vm140_vm0, %v1623_v57, 0.0  ;;  %vm1676_vm1 = vweird.f32 %v2337_v7 }
 0xefa   :  { %2338 = vrsqrt.f32 %v1666_v50  ;;  %1632 = vadd.xlane.f32.xlu1 %v1631_v33  ;;  %vm1677_vm5 = vmor %vm1675_vm4, %vm1676_vm1  ;;  %vm1685_vm7 = vweird.f32 %v1666_v50 }
 0xefb   :  { %v1671_v18 = vmul.f32 %v2337_v7, %v1670_v28 }
 0xefc   :  { %v1618_v10 = vpop.f32.mrf.mxu0 }
 0xefd   :  { %v1672_v12 = vmul.f32 0.5, %v1671_v18  ;;  %v1619_v39 = vadd.f32 %v2377_v49, %v1618_v10 }
 0xeff   :  { %v1673_v41 = vsub.f32 1.5, %v1672_v12  ;;  %v1624_v30 = vadd.f32 %v1619_v39, %v3087_v11 }
 0xf00   :  { %v2339_v1 = vpop.eup %2338 }
 0xf01   :  { %v1674_v16 = vmul.f32 %v2337_v7, %v1673_v41  ;;  %v1680_v17 = vmul.f32 %v2339_v1, %v1666_v50  ;;  %v1634_v38 = vsel %vm140_vm0, %v1624_v30, 0.0  ;;  %vm1686_vm6 = vweird.f32 %v2339_v1 }
 0xf02   :  { %1635 = vadd.xlane.f32.xlu1 %v1634_v38  ;;  %vm1687_vm8 = vmor %vm1685_vm7, %vm1686_vm6 }
 0xf03   :  { %v1678_v31 = vsel %vm1677_vm5, %v2337_v7, %v1674_v16  ;;  %v1681_v2 = vmul.f32 %v2339_v1, %v1680_v17 }
 0xf04   :  { %v1709_v63 = vmul.f32 %v1678_v31, %v1641_v23 }
 0xf05   :  { %v1682_v0 = vmul.f32 0.5, %v1681_v2 }
 0xf06   :  { %v1713_v37 = vmul.f32 %v3267_v35, %v1709_v63 }
 0xf07   :  { %v1683_v11 = vsub.f32 1.5, %v1682_v0 }
 0xf08   :  { %v3276_v43 = vadd.f32 %v3273_v3, %v1713_v37 }
 0xf09   :  { %v1684_v40 = vmul.f32 %v2339_v1, %v1683_v11 }
 0xf0a   :  { %2203 = vmatmul.msk.f32.vlgmr.msrb.gmra.mxu3 %vm140_vm0, %v3276_v43 }
 0xf0b   :  { %v1688_v36 = vsel %vm1687_vm8, %v2339_v1, %v1684_v40 }
 0xf0c   :  { %v1710_v22 = vmul.f32 %v1688_v36, %v1642_v26 }
 0xf0e   :  { %v1714_v19 = vmul.f32 %v3267_v35, %v1710_v22 }
 0xf10   :  { %v3282_v47 = vadd.f32 %v3273_v3, %v1714_v19 }
 0xf12   :  { %2204 = vmatmul.msk.f32.gmra.mxu3 %vm140_vm0, %v3282_v47 }
 0xf6d   :  { %v1633_v58 = vpop.xlane.xlu1 %1632 }
 0xf6e   :  { %v1639_v59 = vmul.f32 %v1633_v58, %v2835_v6 }
 0xf70   :  { %v3287_v60 = vsub.f32 %v1623_v57, %v1639_v59 }
 0xf72   :  { %v1647_v61 = vmul.f32 %v3287_v60, %v3287_v60 }
 0xf74   :  { %v1655_v25 = vsel %vm140_vm0, %v1647_v61, 0.0 }
 0xf75   :  { %1656 = vadd.xlane.f32.xlu1 %v1655_v25  ;;  %v1636_v54 = vpop.xlane.xlu1 %1635 }
 0xf76   :  { %v1640_v27 = vmul.f32 %v1636_v54, %v2835_v6 }
 0xf78   :  { %v3293_v49 = vsub.f32 %v1624_v30, %v1640_v27 }
 0xf7a   :  { %v1648_v32 = vmul.f32 %v3293_v49, %v3293_v49 }
 0xf7c   :  { %v1658_v9 = vsel %vm140_vm0, %v1648_v32, 0.0 }
 0xf7d   :  { %1659 = vadd.xlane.f32.xlu0 %v1658_v9 }
 0xf8d   :  { %v1750_v15 = vpop.f32.mrf.mxu3 }
 0xf8e   :  { %v3304_v24 = vadd.f32 %v3301_v20, %v1750_v15 }
 0xf90   :  { %v1766_v29 = vmul.f32 0.70710677, %v3304_v24 }
 0xf92   :  { %v1770_v34 = vmul.f32 %v1766_v29, %v1766_v29 }
 0xf94   :  { %v1771_v5 = vmin.f32 %v1770_v34, 16.0 }
 0xf95   :  { %v1753_v46 = vpop.f32.mrf.mxu3 }
 0xf96   :  { %v1772_v23 = vmul.f32 2.1237322e-06, %v1771_v5  ;;  %v1783_v48 = vmul.f32 3.8918573e-05, %v1771_v5  ;;  %v3308_v4 = vadd.f32 %v3301_v20, %v1753_v46 }
 0xf98   :  { %v1773_v44 = vadd.f32 0.00028619796, %v1772_v23  ;;  %v1784_v42 = vadd.f32 0.001143296, %v1783_v48  ;;  %v3311_v8 = vmul.f32 0.70710677, %v3308_v4 }
 0xf9a   :  { %v1774_v26 = vmul.f32 %v1773_v44, %v1771_v5  ;;  %v1785_v14 = vmul.f32 %v1784_v42, %v1771_v5  ;;  %v1810_v52 = vmul.f32 %v3311_v8, %v3311_v8 }
 0xf9c   :  { %v1786_v62 = vadd.f32 0.014752088, %v1785_v14  ;;  %v1775_v51 = vadd.f32 0.0036580483, %v1774_v26  ;;  %v1811_v13 = vmin.f32 %v1810_v52, 16.0 }
 0xf9e   :  { %v1787_v55 = vmul.f32 %v1786_v62, %v1771_v5  ;;  %v1812_v56 = vmul.f32 2.1237322e-06, %v1811_v13  ;;  %v1823_v21 = vmul.f32 3.8918573e-05, %v1811_v13  ;;  %v1776_v53 = vmul.f32 %v1775_v51, %v1771_v5 }
 0xfa0   :  { %v1788_v45 = vadd.f32 0.112945676, %v1787_v55  ;;  %v1813_v57 = vadd.f32 0.00028619796, %v1812_v56  ;;  %v1824_v7 = vadd.f32 0.001143296, %v1823_v21 }
 0xfa1   :  { %v1777_v10 = vadd.f32 0.05243302, %v1776_v53  ;;  %v1762_v55 = vmul.f32 0.5, %v3304_v24 }
 0xfa2   :  { %v1789_v50 = vmul.f32 %v1788_v45, %v1771_v5  ;;  %v1814_v28 = vmul.f32 %v1813_v57, %v1811_v13  ;;  %v1825_v33 = vmul.f32 %v1824_v7, %v1811_v13 }
 0xfa3   :  { %v1778_v16 = vmul.f32 %v1777_v10, %v1771_v5 }
 0xfa4   :  { %v1790_v18 = vadd.f32 0.4994258, %v1789_v50  ;;  %v1826_v12 = vadd.f32 0.014752088, %v1825_v33  ;;  %v1815_v41 = vadd.f32 0.0036580483, %v1814_v28 }
 0xfa5   :  { %v1779_v2 = vadd.f32 0.18741608, %v1778_v16  ;;  %v1763_v28 = vmul.f32 0.5, %v3308_v4 }
 0xfa6   :  { %v1791_v39 = vmul.f32 %v1790_v18, %v1771_v5  ;;  %v1827_v30 = vmul.f32 %v1826_v12, %v1811_v13  ;;  %v1816_v38 = vmul.f32 %v1815_v41, %v1811_v13 }
 0xfa7   :  { %v1780_v40 = vmul.f32 %v1779_v2, %v1771_v5 }
 0xfa8   :  { %v1792_v1 = vadd.f32 1.0, %v1791_v39  ;;  %v1828_v17 = vadd.f32 0.112945676, %v1827_v30  ;;  %v1817_v0 = vadd.f32 0.05243302, %v1816_v38 }
 0xfa9   :  { %v1781_v61 = vadd.f32 1.1283791, %v1780_v40 }
 0xfaa   :  { %2340 = vrcp.f32 %v1792_v1  ;;  %v1829_v31 = vmul.f32 %v1828_v17, %v1811_v13  ;;  %v1818_v19 = vmul.f32 %v1817_v0, %v1811_v13  ;;  %v1804_v59 = vand.u32 2147483648, %v1792_v1 }
 0xfab   :  { %v1802_v54 = vand.u32 2147483647, %v1792_v1  ;;  %vm1798_vm10 = vweird.f32 %v1792_v1  ;;  %v1782_v34 = vmul.f32 %v1781_v61, %v1766_v29 }
 0xfac   :  { %v1830_v63 = vadd.f32 0.4994258, %v1829_v31  ;;  %v1819_v27 = vadd.f32 0.18741608, %v1818_v19  ;;  %v1805_v9 = vor.u32 1.1754944e-38, %v1804_v59 }
 0xfad   :  { %vm1803_vm12 = vcmp.eq.f32.partialorder %v1802_v54, 8.507059e+37  ;;  %v3339_v54 = vld [vmem:[%s3432_s14] ss:$0 sm:$0xff] }
 0xfae   :  { %v1831_v37 = vmul.f32 %v1830_v63, %v1811_v13  ;;  %v1820_v23 = vmul.f32 %v1819_v27, %v1811_v13 }
 0xfb0   :  { %v2341_v11 = vpop.eup %2340  ;;  %v1832_v22 = vadd.f32 1.0, %v1831_v37  ;;  %v1821_v52 = vadd.f32 1.1283791, %v1820_v23 }
 0xfb1   :  { %v1794_v36 = vmul.f32 %v2341_v11, %v1792_v1  ;;  %vm1799_vm9 = vweird.f32 %v2341_v11 }
 0xfb2   :  { %2342 = vrcp.f32 %v1832_v22  ;;  %vm1800_vm11 = vmor %vm1798_vm10, %vm1799_vm9  ;;  %v1844_v14 = vand.u32 2147483648, %v1832_v22  ;;  %v1842_v51 = vand.u32 2147483647, %v1832_v22  ;;  %vm1838_vm14 = vweird.f32 %v1832_v22 }
 0xfb3   :  { %v1795_v58 = vsub.f32 1.0, %v1794_v36  ;;  %v1822_v53 = vmul.f32 %v1821_v52, %v3311_v8 }
 0xfb4   :  { %v1845_v29 = vor.u32 1.1754944e-38, %v1844_v14  ;;  %vm1843_vm3 = vcmp.eq.f32.partialorder %v1842_v51, 8.507059e+37 }
 0xfb5   :  { %v1796_v25 = vmul.f32 %v2341_v11, %v1795_v58 }
 0xfb7   :  { %v1797_v32 = vadd.f32 %v2341_v11, %v1796_v25 }
 0xfb8   :  { %v2343_v15 = vpop.eup %2342 }
 0xfb9   :  { %v1801_v46 = vsel %vm1800_vm11, %v2341_v11, %v1797_v32  ;;  %v1834_v48 = vmul.f32 %v2343_v15, %v1832_v22  ;;  %vm1839_vm13 = vweird.f32 %v2343_v15 }
 0xfba   :  { %v1806_v5 = vsel %vm1803_vm12, %v1805_v9, %v1801_v46  ;;  %vm1840_vm2 = vmor %vm1838_vm14, %vm1839_vm13 }
 0xfbb   :  { %v1807_v44 = vmul.f32 %v1806_v5, %v1782_v34  ;;  %v1835_v42 = vsub.f32 1.0, %v1834_v48 }
 0xfbd   :  { %v2207_v26 = vclamps-f32 %v1807_v44, 1.0  ;;  %v1836_v62 = vmul.f32 %v2343_v15, %v1835_v42 }
 0xfbf   :  { %v1930_v56 = vadd.f32 1.0, %v2207_v26  ;;  %v1837_v21 = vadd.f32 %v2343_v15, %v1836_v62 }
 0xfc1   :  { %v1934_v45 = vmul.f32 %v1930_v56, %v1762_v55  ;;  %v1841_v13 = vsel %vm1840_vm2, %v2343_v15, %v1837_v21 }
 0xfc2   :  { %v1846_v57 = vsel %vm1843_vm3, %v1845_v29, %v1841_v13 }
 0xfc3   :  { %2211 = vmatmul.msk.f32.vlgmr.msra.gmra.mxu1 %vm993_vm15, %v1934_v45  ;;  %v1847_v7 = vmul.f32 %v1846_v57, %v1822_v53 }
 0xfc5   :  { %v2208_v50 = vclamps-f32 %v1847_v7, 1.0 }
 0xfc7   :  { %v1931_v33 = vadd.f32 1.0, %v2208_v50 }
 0xfc9   :  { %v1935_v18 = vmul.f32 %v1931_v33, %v1763_v28 }
 0xfcb   :  { %2212 = vmatmul.msk.f32.gmra.mxu1 %vm993_vm15, %v1935_v18 }
 0xfe8   :  { %v1657_v24 = vpop.xlane.xlu1 %1656 }
 0xfe9   :  { %v1663_v10 = vmul.f32 %v1657_v24, %v2835_v6 }
 0xfeb   :  { %v1667_v12 = vadd.f32 1e-05, %v1663_v10 }
 0xfed   :  { %2344 = vrsqrt.f32 %v1667_v12  ;;  %vm1695_vm4 = vweird.f32 %v1667_v12 }
 0xff0   :  { %v1660_v39 = vpop.xlane.xlu0 %1659 }
 0xff1   :  { %v1664_v8 = vmul.f32 %v1660_v39, %v2835_v6 }
 0xff3   :  { %v2345_v41 = vpop.eup %2344  ;;  %v1668_v30 = vadd.f32 1e-05, %v1664_v8 }
 0xff4   :  { %v1690_v1 = vmul.f32 %v2345_v41, %v1667_v12  ;;  %vm1696_vm1 = vweird.f32 %v2345_v41 }
 0xff5   :  { %2346 = vrsqrt.f32 %v1668_v30  ;;  %vm1697_vm5 = vmor %vm1695_vm4, %vm1696_vm1  ;;  %vm1705_vm7 = vweird.f32 %v1668_v30 }
 0xff6   :  { %v1691_v16 = vmul.f32 %v2345_v41, %v1690_v1 }
 0xff8   :  { %v1692_v17 = vmul.f32 0.5, %v1691_v16 }
 0xffa   :  { %v1693_v38 = vsub.f32 1.5, %v1692_v17 }
 0xffb   :  { %v2347_v4 = vpop.eup %2346 }
 0xffc   :  { %v1694_v31 = vmul.f32 %v2345_v41, %v1693_v38  ;;  %v1700_v2 = vmul.f32 %v2347_v4, %v1668_v30  ;;  %vm1706_vm6 = vweird.f32 %v2347_v4 }
 0xffd   :  { %vm1707_vm8 = vmor %vm1705_vm7, %vm1706_vm6 }
 0xffe   :  { %v1698_v63 = vsel %vm1697_vm5, %v2345_v41, %v1694_v31  ;;  %v1701_v0 = vmul.f32 %v2347_v4, %v1700_v2 }
 0xfff   :  { %v1711_v37 = vmul.f32 %v1698_v63, %v3287_v60 }
0x1000   :  { %v1702_v11 = vmul.f32 0.5, %v1701_v0 }
0x1001   :  { %v1715_v40 = vmul.f32 %v3267_v35, %v1711_v37 }
0x1002   :  { %v1703_v36 = vsub.f32 1.5, %v1702_v11 }
0x1003   :  { %v3325_v22 = vadd.f32 %v3273_v3, %v1715_v40 }
0x1004   :  { %v1704_v19 = vmul.f32 %v2347_v4, %v1703_v36 }
0x1005   :  { %2205 = vmatmul.msk.f32.gmra.mxu3 %vm140_vm0, %v3325_v22 }
0x1006   :  { %v1708_v58 = vsel %vm1707_vm8, %v2347_v4, %v1704_v19 }
0x1007   :  { %v1712_v59 = vmul.f32 %v1708_v58, %v3293_v49 }
0x1009   :  { %v1716_v61 = vmul.f32 %v3267_v35, %v1712_v59 }
0x100b   :  { %v3332_v60 = vadd.f32 %v3273_v3, %v1716_v61 }
0x100d   :  { %2206 = vmatmul.msk.f32.gmra.mxu3 %vm140_vm0, %v3332_v60 }
0x1040   :  { %v1967_v25 = vpop.f32.mrf.mxu1 }
0x1041   :  { %v1968_v27 = vadd.f32 %v3339_v54, %v1967_v25 }
0x1043   :  { %v3343_v32 = vadd.f32 %v1968_v27, %v3276_v43 }
0x1045   :  { %v1983_v35 = vsel %vm140_vm0, %v3343_v32, 0.0 }
0x1046   :  { %1984 = vadd.xlane.f32.xlu2 %v1983_v35 }
0x1048   :  { %v1970_v3 = vpop.f32.mrf.mxu1 }
0x1049   :  { %v1971_v49 = vadd.f32 %v3339_v54, %v1970_v3 }
0x104b   :  { %v3349_v9 = vadd.f32 %v1971_v49, %v3282_v47 }
0x104d   :  { %v1986_v15 = vsel %vm140_vm0, %v3349_v9, 0.0 }
0x104e   :  { %1987 = vadd.xlane.f32.xlu1 %v1986_v15 }
0x1088   :  { %v1756_v34 = vpop.f32.mrf.mxu3 }
0x1089   :  { %v3354_v46 = vadd.f32 %v3301_v20, %v1756_v34 }
0x108b   :  { %v1768_v43 = vmul.f32 0.70710677, %v3354_v46 }
0x108d   :  { %v1850_v5 = vmul.f32 %v1768_v43, %v1768_v43 }
0x108f   :  { %v1851_v23 = vmin.f32 %v1850_v5, 16.0 }
0x1090   :  { %v1759_v48 = vpop.f32.mrf.mxu3 }
0x1091   :  { %v1852_v44 = vmul.f32 2.1237322e-06, %v1851_v23  ;;  %v1863_v42 = vmul.f32 3.8918573e-05, %v1851_v23  ;;  %v3358_v26 = vadd.f32 %v3301_v20, %v1759_v48 }
0x1093   :  { %v1853_v47 = vadd.f32 0.00028619796, %v1852_v44  ;;  %v1864_v14 = vadd.f32 0.001143296, %v1863_v42  ;;  %v3361_v52 = vmul.f32 0.70710677, %v3358_v26 }
0x1095   :  { %v1854_v62 = vmul.f32 %v1853_v47, %v1851_v23  ;;  %v1865_v51 = vmul.f32 %v1864_v14, %v1851_v23  ;;  %v1890_v55 = vmul.f32 %v3361_v52, %v3361_v52 }
0x1097   :  { %v1866_v56 = vadd.f32 0.014752088, %v1865_v51  ;;  %v1855_v21 = vadd.f32 0.0036580483, %v1854_v62  ;;  %v1891_v45 = vmin.f32 %v1890_v55, 16.0 }
0x1099   :  { %v1867_v29 = vmul.f32 %v1866_v56, %v1851_v23  ;;  %v1892_v53 = vmul.f32 2.1237322e-06, %v1891_v45  ;;  %v1903_v13 = vmul.f32 3.8918573e-05, %v1891_v45  ;;  %v1856_v7 = vmul.f32 %v1855_v21, %v1851_v23 }
0x109a   :  { %v1764_v21 = vmul.f32 0.5, %v3354_v46 }
0x109b   :  { %v1868_v57 = vadd.f32 0.112945676, %v1867_v29  ;;  %v1893_v20 = vadd.f32 0.00028619796, %v1892_v53  ;;  %v1904_v50 = vadd.f32 0.001143296, %v1903_v13 }
0x109c   :  { %v1857_v10 = vadd.f32 0.05243302, %v1856_v7 }
0x109d   :  { %v1869_v28 = vmul.f32 %v1868_v57, %v1851_v23  ;;  %v1894_v33 = vmul.f32 %v1893_v20, %v1891_v45  ;;  %v1905_v18 = vmul.f32 %v1904_v50, %v1891_v45 }
0x109e   :  { %v1858_v1 = vmul.f32 %v1857_v10, %v1851_v23 }
0x109f   :  { %v1870_v24 = vadd.f32 0.4994258, %v1869_v28  ;;  %v1906_v12 = vadd.f32 0.014752088, %v1905_v18  ;;  %v1895_v8 = vadd.f32 0.0036580483, %v1894_v33 }
0x10a0   :  { %v1859_v4 = vadd.f32 0.18741608, %v1858_v1 }
0x10a1   :  { %v1871_v39 = vmul.f32 %v1870_v24, %v1851_v23  ;;  %v1907_v41 = vmul.f32 %v1906_v12, %v1891_v45  ;;  %v1896_v17 = vmul.f32 %v1895_v8, %v1891_v45  ;;  %v1765_v24 = vmul.f32 0.5, %v3358_v26 }
0x10a2   :  { %v1860_v37 = vmul.f32 %v1859_v4, %v1851_v23 }
0x10a3   :  { %v1872_v30 = vadd.f32 1.0, %v1871_v39  ;;  %v1908_v16 = vadd.f32 0.112945676, %v1907_v41  ;;  %v1897_v2 = vadd.f32 0.05243302, %v1896_v17 }
0x10a4   :  { %v1861_v59 = vadd.f32 1.1283791, %v1860_v37 }
0x10a5   :  { %2348 = vrcp.f32 %v1872_v30  ;;  %v1909_v38 = vmul.f32 %v1908_v16, %v1891_v45  ;;  %v1898_v36 = vmul.f32 %v1897_v2, %v1891_v45  ;;  %v1884_v58 = vand.u32 2147483648, %v1872_v30 }
0x10a6   :  { %v1882_v25 = vand.u32 2147483647, %v1872_v30  ;;  %vm1878_vm10 = vweird.f32 %v1872_v30  ;;  %v1862_v15 = vmul.f32 %v1861_v59, %v1768_v43  ;;  %v3386_v59 = vld [vmem:[%s3433_s15] ss:$0 sm:$0xff]  ;;  %s2470_s15 = smov [#allocation7]  }
0x10a7   :  { %v1910_v31 = vadd.f32 0.4994258, %v1909_v38  ;;  %v1899_v27 = vadd.f32 0.18741608, %v1898_v36  ;;  %v1885_v3 = vor.u32 1.1754944e-38, %v1884_v58 }
0x10a8   :  { %vm1883_vm12 = vcmp.eq.f32.partialorder %v1882_v25, 8.507059e+37 }
0x10a9   :  { %v1911_v63 = vmul.f32 %v1910_v31, %v1891_v45  ;;  %v1900_v23 = vmul.f32 %v1899_v27, %v1891_v45 }
0x10ab   :  { %v2349_v0 = vpop.eup %2348  ;;  %v1912_v40 = vadd.f32 1.0, %v1911_v63  ;;  %v1901_v62 = vadd.f32 1.1283791, %v1900_v23 }
0x10ac   :  { %v1874_v11 = vmul.f32 %v2349_v0, %v1872_v30  ;;  %vm1879_vm9 = vweird.f32 %v2349_v0 }
0x10ad   :  { %2350 = vrcp.f32 %v1912_v40  ;;  %vm1880_vm11 = vmor %vm1878_vm10, %vm1879_vm9  ;;  %v1924_v47 = vand.u32 2147483648, %v1912_v40  ;;  %v1922_v55 = vand.u32 2147483647, %v1912_v40  ;;  %vm1918_vm14 = vweird.f32 %v1912_v40 }
0x10ae   :  { %v1875_v19 = vsub.f32 1.0, %v1874_v11  ;;  %v1902_v7 = vmul.f32 %v1901_v62, %v3361_v52 }
0x10af   :  { %v1925_v13 = vor.u32 1.1754944e-38, %v1924_v47  ;;  %vm1923_vm3 = vcmp.eq.f32.partialorder %v1922_v55, 8.507059e+37 }
0x10b0   :  { %v1876_v61 = vmul.f32 %v2349_v0, %v1875_v19 }
0x10b2   :  { %v1877_v35 = vadd.f32 %v2349_v0, %v1876_v61 }
0x10b3   :  { %v2351_v49 = vpop.eup %2350 }
0x10b4   :  { %v1881_v34 = vsel %vm1880_vm11, %v2349_v0, %v1877_v35  ;;  %v1914_v48 = vmul.f32 %v2351_v49, %v1912_v40  ;;  %vm1919_vm13 = vweird.f32 %v2351_v49 }
0x10b5   :  { %v1886_v5 = vsel %vm1883_vm12, %v1885_v3, %v1881_v34  ;;  %vm1920_vm2 = vmor %vm1918_vm14, %vm1919_vm13 }
0x10b6   :  { %v1887_v44 = vmul.f32 %v1886_v5, %v1862_v15  ;;  %v1915_v42 = vsub.f32 1.0, %v1914_v48 }
0x10b8   :  { %v2209_v14 = vclamps-f32 %v1887_v44, 1.0  ;;  %v1916_v51 = vmul.f32 %v2351_v49, %v1915_v42 }
0x10b9   :  { %v1985_v56 = vpop.xlane.xlu2 %1984 }
0x10ba   :  { %v1995_v29 = vmul.f32 %v1985_v56, %v2835_v6  ;;  %v1932_v53 = vadd.f32 1.0, %v2209_v14  ;;  %v1917_v43 = vadd.f32 %v2351_v49, %v1916_v51 }
0x10bc   :  { %v1999_v45 = vsub.f32 %v3343_v32, %v1995_v29  ;;  %v1936_v57 = vmul.f32 %v1932_v53, %v1764_v21  ;;  %v1921_v20 = vsel %vm1920_vm2, %v2351_v49, %v1917_v43 }
0x10bd   :  { %v1926_v50 = vsel %vm1923_vm3, %v1925_v13, %v1921_v20 }
0x10be   :  { %2213 = vmatmul.msk.f32.gmra.mxu1 %vm993_vm15, %v1936_v57  ;;  %v2003_v28 = vmul.f32 %v1999_v45, %v1999_v45  ;;  %v1927_v33 = vmul.f32 %v1926_v50, %v1902_v7 }
0x10c0   :  { %v2007_v46 = vsel %vm140_vm0, %v2003_v28, 0.0  ;;  %v2210_v18 = vclamps-f32 %v1927_v33, 1.0 }
0x10c1   :  { %2008 = vadd.xlane.f32.xlu1 %v2007_v46  ;;  %v1988_v32 = vpop.xlane.xlu1 %1987 }
0x10c2   :  { %v1933_v10 = vadd.f32 1.0, %v2210_v18  ;;  %v1996_v30 = vmul.f32 %v1988_v32, %v2835_v6 }
0x10c4   :  { %v1937_v12 = vmul.f32 %v1933_v10, %v1765_v24  ;;  %v2000_v26 = vsub.f32 %v3349_v9, %v1996_v30 }
0x10c6   :  { %2214 = vmatmul.msk.f32.gmra.mxu1 %vm993_vm15, %v1937_v12  ;;  %v2004_v0 = vmul.f32 %v2000_v26, %v2000_v26 }
0x1134   :  { %v2009_v39 = vpop.xlane.xlu1 %2008 }
0x1135   :  { %v2019_v52 = vmul.f32 %v2009_v39, %v2835_v6 }
0x1137   :  { %v2023_v8 = vadd.f32 1e-05, %v2019_v52 }
0x1139   :  { %2352 = vrsqrt.f32 %v2023_v8  ;;  %vm2033_vm1 = vweird.f32 %v2023_v8 }
0x113b   :  { %v1973_v41 = vpop.f32.mrf.mxu1 }
0x113c   :  { %v1974_v1 = vadd.f32 %v3339_v54, %v1973_v41 }
0x113e   :  { %v1981_v16 = vadd.f32 %v1974_v1, %v3325_v22  ;;  %v2010_v22 = vsel %vm140_vm0, %v2004_v0, 0.0 }
0x113f   :  { %v2353_v17 = vpop.eup %2352 }
0x1140   :  { %v2028_v38 = vmul.f32 %v2353_v17, %v2023_v8  ;;  %v1989_v4 = vsel %vm140_vm0, %v1981_v16, 0.0  ;;  %vm2034_vm15 = vweird.f32 %v2353_v17 }
0x1141   :  { %1990 = vadd.xlane.f32.xlu0 %v1989_v4  ;;  %vm2035_vm4 = vmor %vm2033_vm1, %vm2034_vm15 }
0x1142   :  { %v2029_v31 = vmul.f32 %v2353_v17, %v2028_v38 }
0x1143   :  { %v1976_v63 = vpop.f32.mrf.mxu1 }
0x1144   :  { %v2030_v2 = vmul.f32 0.5, %v2029_v31  ;;  %v1977_v37 = vadd.f32 %v3339_v54, %v1976_v63 }
0x1146   :  { %v2031_v11 = vsub.f32 1.5, %v2030_v2  ;;  %v1982_v40 = vadd.f32 %v1977_v37, %v3332_v60  ;;  %v3392_v60 = vld [vmem:[%s3434_s16] ss:$0 sm:$0xff]  ;;  %s2087_s16 = sshll.u32 %s2470_s15, 4  ;;  %s2088_s16 = int_to_ptr.vmem [resolvable:$true] %s2087_s16 }
0x1148   :  { %v2032_v36 = vmul.f32 %v2353_v17, %v2031_v11  ;;  %v1992_v9 = vsel %vm140_vm0, %v1982_v40, 0.0 }
0x1149   :  { %2011 = vadd.xlane.f32.xlu0 %v2010_v22  ;;  %1993 = vadd.xlane.f32.xlu2 %v1992_v9 }
0x114a   :  { %v2036_v19 = vsel %vm2035_vm4, %v2353_v17, %v2032_v36 }
0x114b   :  { %v2067_v58 = vmul.f32 %v2036_v19, %v1999_v45 }
0x114d   :  { %v2071_v54 = vmul.f32 %v3386_v59, %v2067_v58 }
0x114f   :  { %v2075_v61 = vadd.f32 %v3392_v60, %v2071_v54 }
0x1151   :  { %2079 = vst.msk [vmem:[#allocation7] sm:$0xff] %vm140_vm0, %v2075_v61 }
0x11b4   :  { %v1991_v25 = vpop.xlane.xlu0 %1990 }
0x11b5   :  { %v1997_v27 = vmul.f32 %v1991_v25, %v2835_v6 }
0x11b7   :  { %v2001_v35 = vsub.f32 %v1981_v16, %v1997_v27 }
0x11b9   :  { %v2005_v3 = vmul.f32 %v2001_v35, %v2001_v35 }
0x11bb   :  { %v2013_v49 = vsel %vm140_vm0, %v2005_v3, 0.0 }
0x11bc   :  { %2014 = vadd.xlane.f32.xlu2 %v2013_v49  ;;  %v2012_v15 = vpop.xlane.xlu0 %2011  ;;  %v1994_v34 = vpop.xlane.xlu2 %1993 }
0x11bd   :  { %v2020_v5 = vmul.f32 %v2012_v15, %v2835_v6  ;;  %v1998_v23 = vmul.f32 %v1994_v34, %v2835_v6 }
0x11bf   :  { %v2024_v48 = vadd.f32 1e-05, %v2020_v5  ;;  %v2002_v44 = vsub.f32 %v1982_v40, %v1998_v23 }
0x11c1   :  { %2354 = vrsqrt.f32 %v2024_v48  ;;  %v2006_v42 = vmul.f32 %v2002_v44, %v2002_v44  ;;  %vm2043_vm6 = vweird.f32 %v2024_v48 }
0x11c3   :  { %v2016_v47 = vsel %vm140_vm0, %v2006_v42, 0.0 }
0x11c4   :  { %2017 = vadd.xlane.f32.xlu1 %v2016_v47 }
0x11c7   :  { %v2355_v14 = vpop.eup %2354 }
0x11c8   :  { %v2038_v62 = vmul.f32 %v2355_v14, %v2024_v48  ;;  %vm2044_vm5 = vweird.f32 %v2355_v14 }
0x11c9   :  { %vm2045_vm7 = vmor %vm2043_vm6, %vm2044_vm5 }
0x11ca   :  { %v2039_v51 = vmul.f32 %v2355_v14, %v2038_v62 }
0x11cc   :  { %v2040_v55 = vmul.f32 0.5, %v2039_v51 }
0x11ce   :  { %v2041_v56 = vsub.f32 1.5, %v2040_v55 }
0x11d0   :  { %v2042_v21 = vmul.f32 %v2355_v14, %v2041_v56 }
0x11d2   :  { %v2046_v29 = vsel %vm2045_vm7, %v2355_v14, %v2042_v21 }
0x11d3   :  { %v2068_v53 = vmul.f32 %v2046_v29, %v2000_v26 }
0x11d5   :  { %v2072_v43 = vmul.f32 %v3386_v59, %v2068_v53 }
0x11d7   :  { %v2076_v13 = vadd.f32 %v3392_v60, %v2072_v43 }
0x11d9   :  { %2080 = vst.msk [vmem:[#allocation7 + $0x8] sm:$0xff] %vm140_vm0, %v2076_v13 }
0x122f   :  { %v2015_v45 = vpop.xlane.xlu2 %2014 }
0x1230   :  { %v2021_v57 = vmul.f32 %v2015_v45, %v2835_v6 }
0x1232   :  { %v2025_v7 = vadd.f32 1e-05, %v2021_v57 }
0x1234   :  { %2356 = vrsqrt.f32 %v2025_v7  ;;  %vm2053_vm9 = vweird.f32 %v2025_v7 }
0x1237   :  { %v2018_v20 = vpop.xlane.xlu1 %2017 }
0x1238   :  { %v2022_v50 = vmul.f32 %v2018_v20, %v2835_v6 }
0x123a   :  { %v2357_v28 = vpop.eup %2356  ;;  %v2026_v46 = vadd.f32 1e-05, %v2022_v50 }
0x123b   :  { %v2048_v33 = vmul.f32 %v2357_v28, %v2025_v7  ;;  %vm2054_vm8 = vweird.f32 %v2357_v28 }
0x123c   :  { %2358 = vrsqrt.f32 %v2026_v46  ;;  %vm2055_vm10 = vmor %vm2053_vm9, %vm2054_vm8  ;;  %vm2063_vm12 = vweird.f32 %v2026_v46 }
0x123d   :  { %v2049_v18 = vmul.f32 %v2357_v28, %v2048_v33 }
0x123f   :  { %v2050_v24 = vmul.f32 0.5, %v2049_v18 }
0x1241   :  { %v2051_v10 = vsub.f32 1.5, %v2050_v24 }
0x1242   :  { %v2359_v12 = vpop.eup %2358 }
0x1243   :  { %v2052_v32 = vmul.f32 %v2357_v28, %v2051_v10  ;;  %v2058_v39 = vmul.f32 %v2359_v12, %v2026_v46  ;;  %vm2064_vm11 = vweird.f32 %v2359_v12 }
0x1244   :  { %vm2065_vm13 = vmor %vm2063_vm12, %vm2064_vm11 }
0x1245   :  { %v2056_v52 = vsel %vm2055_vm10, %v2357_v28, %v2052_v32  ;;  %v2059_v41 = vmul.f32 %v2359_v12, %v2058_v39 }
0x1246   :  { %v2069_v8 = vmul.f32 %v2056_v52, %v2001_v35 }
0x1247   :  { %v2060_v1 = vmul.f32 0.5, %v2059_v41 }
0x1248   :  { %v2073_v30 = vmul.f32 %v3386_v59, %v2069_v8 }
0x1249   :  { %v2061_v16 = vsub.f32 1.5, %v2060_v1 }
0x124a   :  { %v2077_v6 = vadd.f32 %v3392_v60, %v2073_v30 }
0x124b   :  { %v2062_v17 = vmul.f32 %v2359_v12, %v2061_v16 }
0x124c   :  { %2081 = vst.msk [vmem:[#allocation7 + $0x10] sm:$0xff] %vm140_vm0, %v2077_v6 }
0x124d   :  { %v2066_v26 = vsel %vm2065_vm13, %v2359_v12, %v2062_v17 }
0x124e   :  { %v2070_v38 = vmul.f32 %v2066_v26, %v2002_v44 }
0x1250   :  { %v2074_v4 = vmul.f32 %v3386_v59, %v2070_v38 }
0x1252   :  { %v2078_v31 = vadd.f32 %v3392_v60, %v2074_v4 }
0x1254   :  { %2082 = vst.msk [vmem:[#allocation7 + $0x18] sm:$0xff] %vm140_vm0, %v2078_v31 }
0x1255   :  { %2095 = dma.vmem_to_hbm [thread:$0]  %s2088_s16, 512, %s2090_s27, [#allocation4], %s2463_s18, %s2463_s18, %s2464_s19  }
0x1256   :  { %2460 = dma.done.wait [#allocation4], 512  }
0x1257   :  { %2461 = vsyncadd [#allocation4], 4294966784 }
0x1258   :  { %2100 = vsyncpa [#allocation3], 1 }
0x1259   :  { %2101 = vsyncpa [#allocation6], 1 }
0x125a   :  { %2102 = vsyncpa [#allocation4], 1 }

</bundles_post_ra>
